<compile_context>
chip_gen: v5e
topology: v5e:2x2
jax: 0.10.0
libtpu: 0.0.40
codegen_flags: <defaults>
</compile_context>

<pallas_src>
import jax
import jax.numpy as jnp
from jax.experimental import pallas as pl
from jax.experimental.pallas import tpu as pltpu


def _round_up(n, m):
    return ((n + m - 1) // m) * m


def _choose_tile_b(batch, requested):
    """Batch tile: multiple of 128, no bigger than needed, >=2 grid steps
    when the (128-padded) batch allows it (v7x dual-TC + pipelining)."""
    b128 = _round_up(batch, 128)
    tile = min(_round_up(max(requested, 128), 128), b128)
    if b128 >= 256 and _round_up(batch, tile) // tile < 2:
        tile = max(128, _round_up(b128 // 2, 128))
    return tile


def discriminator_kernel(x_ref, w1_ref, b1_ref, w2_ref, b2_ref, w3_ref, b3_ref,
                         o_ref):
    # fc1: bf16 MXU matmul, f32 accumulation; bias + ReLU in f32.
    h1 = jnp.dot(x_ref[...], w1_ref[...], preferred_element_type=jnp.float32)
    h1 = jnp.maximum(h1 + b1_ref[...], 0.0)
    # fc2: same pattern.
    h2 = jnp.dot(h1.astype(jnp.bfloat16), w2_ref[...],
                 preferred_element_type=jnp.float32)
    h2 = jnp.maximum(h2 + b2_ref[...], 0.0)
    # out layer (N=1): VPU multiply + lane (XLU) reduction instead of a
    # 1-column MXU matmul; scalar bias comes from SMEM.
    logits = jnp.sum(h2 * w3_ref[...], axis=-1, keepdims=True) + b3_ref[0]
    # Compact (tile_b, 1) store: tiny masked vst in VMEM, 128x less HBM
    # writeback than a lane-broadcast block.
    o_ref[...] = jax.nn.sigmoid(logits).astype(o_ref.dtype)


def prepare_params(params):
    """One-time weight prep (padding + bf16 casts), hoisted out of forward.

    Incoming params are stored "transposed" vs PyTorch: w1 [F,H], w2 [H,H],
    w3 [H,1], biases [1,H] / [1,1] (all f32).
    """
    w1, b1, w2, b2, w3, b3 = (params["w1"], params["b1"], params["w2"],
                              params["b2"], params["w3"], params["b3"])
    F, H = w1.shape
    assert w2.shape == (H, H) and w3.shape == (H, 1)
    F_pad = _round_up(F, 128)
    H_pad = _round_up(H, 128)          # 200 -> 256: one clean MXU tile

    # Zero-pad weights AND biases so padded hidden lanes stay exact zeros
    # after bias-add + ReLU (required for fc2 correctness).
    w1_p = jnp.zeros((F_pad, H_pad), jnp.bfloat16).at[:F, :H].set(
        w1.astype(jnp.bfloat16))
    b1_p = jnp.zeros((1, H_pad), jnp.float32).at[:, :H].set(b1)
    w2_p = jnp.zeros((H_pad, H_pad), jnp.bfloat16).at[:H, :H].set(
        w2.astype(jnp.bfloat16))
    b2_p = jnp.zeros((1, H_pad), jnp.float32).at[:, :H].set(b2)
    w3_row = jnp.zeros((1, H_pad), jnp.float32).at[:, :H].set(w3.reshape(1, H))
    b3_s = b3.reshape((1,)).astype(jnp.float32)
    return {"w1": w1_p, "b1": b1_p, "w2": w2_p, "b2": b2_p,
            "w3": w3_row, "b3": b3_s, "F": F, "H": H}


def discriminator_forward(x, prep, *, tile_b=1024):
    """x: [B, F] float32; prep: output of prepare_params.  Returns [B, 1]."""
    B, F = x.shape
    w1_p, b1_p, w2_p, b2_p, w3_row, b3_s = (prep["w1"], prep["b1"], prep["w2"],
                                            prep["b2"], prep["w3"], prep["b3"])
    F_pad, H_pad = w1_p.shape
    assert F == prep["F"] and F <= F_pad

    tile_b = _choose_tile_b(B, tile_b)
    B_pad = _round_up(B, tile_b)
    grid = (B_pad // tile_b,)

    # Only x is padded/cast per call (bf16 for the MXU).
    x_p = jnp.zeros((B_pad, F_pad), jnp.bfloat16).at[:B, :F].set(
        x.astype(jnp.bfloat16))

    const = lambda shape: pl.BlockSpec(shape, lambda i: (0,) * len(shape))

    # VMEM budget: x/out double-buffered + resident weights + f32 intermediates.
    vmem_est = (2 * tile_b * F_pad * 2          # x tiles (bf16, 2 buffers)
                + 2 * tile_b * 128 * 4          # out tiles (lane-padded, 2 bufs)
                + 2 * (F_pad + H_pad) * H_pad * 2   # w1 + w2 (bf16)
                + 6 * 8 * H_pad * 4             # b1/b2/w3 rows (sublane-padded)
                + 3 * tile_b * H_pad * 4)       # h1/h2/temp intermediates (f32)
    vmem_limit = int(min(max(2 * vmem_est, 32 << 20), 64 << 20))

    cost = pl.CostEstimate(
        flops=2 * B_pad * (F_pad * H_pad + H_pad * H_pad + H_pad),
        transcendentals=B_pad,
        bytes_accessed=int(x_p.size * 2 + w1_p.size * 2 + w2_p.size * 2
                           + (b1_p.size + b2_p.size + w3_row.size + 1) * 4
                           + B_pad * 4))

    out = pl.pallas_call(
        discriminator_kernel,
        out_shape=jax.ShapeDtypeStruct((B_pad, 1), jnp.float32),
        grid_spec=pltpu.PrefetchScalarGridSpec(
            num_scalar_prefetch=0,
            grid=grid,
            in_specs=[
                pl.BlockSpec((tile_b, F_pad), lambda i: (i, 0)),   # x (tiled)
                const((F_pad, H_pad)),                             # w1 (resident)
                const((1, H_pad)),                                 # b1
                const((H_pad, H_pad)),                             # w2 (resident)
                const((1, H_pad)),                                 # b2
                const((1, H_pad)),                                 # w3 row
                pl.BlockSpec(memory_space=pltpu.MemorySpace.SMEM), # b3 scalar
            ],
            out_specs=pl.BlockSpec((tile_b, 1), lambda i: (i, 0)),
        ),
        compiler_params=pltpu.CompilerParams(
            dimension_semantics=("parallel",),
            vmem_limit_bytes=vmem_limit),
        cost_estimate=cost,
    )(x_p, w1_p, b1_p, w2_p, b2_p, w3_row, b3_s)

    return out[:B]


def init_params(key, input_features, hidden_size=200):
    """Deterministic synthetic init (PyTorch Linear shapes, stored transposed)."""
    k1, k2, k3, k4, k5, k6 = jax.random.split(key, 6)

    def uinit(k, shape, fan_in):
        bound = 1.0 / jnp.sqrt(fan_in)
        return jax.random.uniform(k, shape, jnp.float32, -bound, bound)

    return {
        # fc1: PyTorch weight [H, F] -> stored as [F, H]
        "w1": uinit(k1, (input_features, hidden_size), input_features),
        "b1": uinit(k2, (1, hidden_size), input_features),
        # fc2: [H, H]
        "w2": uinit(k3, (hidden_size, hidden_size), hidden_size),
        "b2": uinit(k4, (1, hidden_size), hidden_size),
        # out: PyTorch weight [1, H] -> stored as [H, 1]
        "w3": uinit(k5, (hidden_size, 1), hidden_size),
        "b3": uinit(k6, (1, 1), hidden_size),
    }


def reference_forward(x, params):
    h1 = jnp.maximum(x @ params["w1"] + params["b1"], 0.0)
    h2 = jnp.maximum(h1 @ params["w2"] + params["b2"], 0.0)
    return jax.nn.sigmoid(h2 @ params["w3"] + params["b3"])


if __name__ == "__main__":
    key = jax.random.PRNGKey(0)
    kx, kp = jax.random.split(key)

    batch = 8
    input_features = 32   # small synthetic feature dim
    hidden_size = 200     # matches the PyTorch module

    x = jax.random.normal(kx, (batch, input_features), dtype=jnp.float32)
    params = init_params(kp, input_features, hidden_size)

    # Weight padding / casts done once, outside the per-call path.
    prep = prepare_params(params)
    prep = jax.tree_util.tree_map(
        lambda a: jax.block_until_ready(a) if isinstance(a, jax.Array) else a,
        prep)

    out = discriminator_forward(x, prep)
    out = jax.block_until_ready(out)

    ref = reference_forward(x, params)
    assert out.shape == (batch, 1)
    # bf16 MXU inputs (f32 accumulation) -> loosen tolerance vs f32 reference.
    assert jnp.allclose(out, ref, atol=2e-2, rtol=0.0), "mismatch vs reference"

    print("KERNEL_OK")
</pallas_src>

<mosaic_0001>
module attributes {stable_mosaic.version = 11 : i64} {
  func.func @discriminator_kernel(%arg0: i32, %arg1: memref<128x128xbf16, #tpu.memory_space<vmem>>, %arg2: memref<128x256xbf16, #tpu.memory_space<vmem>>, %arg3: memref<1x256xf32, #tpu.memory_space<vmem>>, %arg4: memref<256x256xbf16, #tpu.memory_space<vmem>>, %arg5: memref<1x256xf32, #tpu.memory_space<vmem>>, %arg6: memref<1x256xf32, #tpu.memory_space<vmem>>, %arg7: memref<1xf32, #tpu.memory_space<smem>>, %arg8: memref<128x1xf32, #tpu.memory_space<vmem>>) attributes {dimension_semantics = [#tpu.dimension_semantics<parallel>], iteration_bounds = array<i64: 1>, scalar_prefetch = 0 : i64, scratch_operands = 0 : i64, tpu.core_type = #tpu.core_type<tc>, window_params = [{transform_indices = @transform_0, window_bounds = array<i64: 128, 128>}, {pipeline_mode = #tpu.pipeline_mode<synchronous>, transform_indices = @transform_1, window_bounds = array<i64: 128, 256>}, {pipeline_mode = #tpu.pipeline_mode<synchronous>, transform_indices = @transform_2, window_bounds = array<i64: 1, 256>}, {pipeline_mode = #tpu.pipeline_mode<synchronous>, transform_indices = @transform_3, window_bounds = array<i64: 256, 256>}, {pipeline_mode = #tpu.pipeline_mode<synchronous>, transform_indices = @transform_4, window_bounds = array<i64: 1, 256>}, {pipeline_mode = #tpu.pipeline_mode<synchronous>, transform_indices = @transform_5, window_bounds = array<i64: 1, 256>}, {transform_indices = @transform_6, window_bounds = array<i64: 1>}, {transform_indices = @transform_7, window_bounds = array<i64: 128, 1>}]} {
    %c0 = arith.constant 0 : index
    %c0_0 = arith.constant 0 : index
    %0 = vector.load %arg1[%c0, %c0_0] : memref<128x128xbf16, #tpu.memory_space<vmem>>, vector<128x128xbf16>
    %c0_1 = arith.constant 0 : index
    %c0_2 = arith.constant 0 : index
    %1 = vector.load %arg2[%c0_1, %c0_2] : memref<128x256xbf16, #tpu.memory_space<vmem>>, vector<128x256xbf16>
    %cst = arith.constant dense<0.000000e+00> : vector<128x256xf32>
    %2 = tpu.matmul %0, %1, %cst {dimension_numbers = #tpu.dot_dimension_numbers<[1], [0], [0], [1], [0, 0, 1, 1], [], []>} : vector<128x128xbf16>, vector<128x256xbf16>, vector<128x256xf32> -> vector<128x256xf32>
    %c0_3 = arith.constant 0 : index
    %c0_4 = arith.constant 0 : index
    %3 = vector.load %arg3[%c0_3, %c0_4] : memref<1x256xf32, #tpu.memory_space<vmem>>, vector<1x256xf32>
    %4 = vector.broadcast %3 : vector<1x256xf32> to vector<128x256xf32>
    %5 = arith.addf %2, %4 : vector<128x256xf32>
    %cst_5 = arith.constant 0.000000e+00 : f32
    %6 = vector.broadcast %cst_5 : f32 to vector<128x256xf32>
    %7 = arith.maximumf %5, %6 : vector<128x256xf32>
    %8 = arith.truncf %7 : vector<128x256xf32> to vector<128x256xbf16>
    %c0_6 = arith.constant 0 : index
    %c0_7 = arith.constant 0 : index
    %9 = vector.load %arg4[%c0_6, %c0_7] : memref<256x256xbf16, #tpu.memory_space<vmem>>, vector<256x256xbf16>
    %cst_8 = arith.constant dense<0.000000e+00> : vector<128x256xf32>
    %10 = tpu.matmul %8, %9, %cst_8 {dimension_numbers = #tpu.dot_dimension_numbers<[1], [0], [0], [1], [0, 0, 1, 1], [], []>} : vector<128x256xbf16>, vector<256x256xbf16>, vector<128x256xf32> -> vector<128x256xf32>
    %c0_9 = arith.constant 0 : index
    %c0_10 = arith.constant 0 : index
    %11 = vector.load %arg5[%c0_9, %c0_10] : memref<1x256xf32, #tpu.memory_space<vmem>>, vector<1x256xf32>
    %12 = vector.broadcast %11 : vector<1x256xf32> to vector<128x256xf32>
    %13 = arith.addf %10, %12 : vector<128x256xf32>
    %cst_11 = arith.constant 0.000000e+00 : f32
    %14 = vector.broadcast %cst_11 : f32 to vector<128x256xf32>
    %15 = arith.maximumf %13, %14 : vector<128x256xf32>
    %c0_12 = arith.constant 0 : index
    %c0_13 = arith.constant 0 : index
    %16 = vector.load %arg6[%c0_12, %c0_13] : memref<1x256xf32, #tpu.memory_space<vmem>>, vector<1x256xf32>
    %17 = vector.broadcast %16 : vector<1x256xf32> to vector<128x256xf32>
    %18 = arith.mulf %15, %17 : vector<128x256xf32>
    %cst_14 = arith.constant dense<0.000000e+00> : vector<128xf32>
    %19 = vector.multi_reduction <add>, %18, %cst_14 [1] : vector<128x256xf32> to vector<128xf32>
    %20 = vector.shape_cast %19 : vector<128xf32> to vector<128x1xf32>
    %c0_15 = arith.constant 0 : index
    %21 = memref.load %arg7[%c0_15] : memref<1xf32, #tpu.memory_space<smem>>
    %22 = vector.broadcast %21 : f32 to vector<128x1xf32>
    %23 = arith.addf %20, %22 : vector<128x1xf32>
    %24 = arith.negf %23 : vector<128x1xf32>
    %25 = math.exp %24 : vector<128x1xf32>
    %cst_16 = arith.constant 1.000000e+00 : f32
    %26 = vector.broadcast %cst_16 : f32 to vector<128x1xf32>
    %27 = arith.addf %26, %25 : vector<128x1xf32>
    %28 = arith.divf %26, %27 : vector<128x1xf32>
    %c0_17 = arith.constant 0 : index
    %c0_18 = arith.constant 0 : index
    %29 = vector.load %arg8[%c0_17, %c0_18] : memref<128x1xf32, #tpu.memory_space<vmem>>, vector<128x1xf32>
    tpu.vector_store %arg8[%c0_17, %c0_18], %28 {strides = array<i32>} : memref<128x1xf32, #tpu.memory_space<vmem>>, vector<128x1xf32>,
    return
  }
  func.func @transform_0(%arg0: i32) -> (i32, i32) {
    %c0_i32 = arith.constant 0 : i32
    %c0_i32_0 = arith.constant 0 : i32
    return %arg0, %c0_i32 : i32, i32
  }
  func.func @transform_1(%arg0: i32) -> (i32, i32) {
    %c0_i32 = arith.constant 0 : i32
    %c0_i32_0 = arith.constant 0 : i32
    %c0_i32_1 = arith.constant 0 : i32
    return %c0_i32, %c0_i32_0 : i32, i32
  }
  func.func @transform_2(%arg0: i32) -> (i32, i32) {
    %c0_i32 = arith.constant 0 : i32
    %c0_i32_0 = arith.constant 0 : i32
    %c0_i32_1 = arith.constant 0 : i32
    return %c0_i32, %c0_i32_0 : i32, i32
  }
  func.func @transform_3(%arg0: i32) -> (i32, i32) {
    %c0_i32 = arith.constant 0 : i32
    %c0_i32_0 = arith.constant 0 : i32
    %c0_i32_1 = arith.constant 0 : i32
    return %c0_i32, %c0_i32_0 : i32, i32
  }
  func.func @transform_4(%arg0: i32) -> (i32, i32) {
    %c0_i32 = arith.constant 0 : i32
    %c0_i32_0 = arith.constant 0 : i32
    %c0_i32_1 = arith.constant 0 : i32
    return %c0_i32, %c0_i32_0 : i32, i32
  }
  func.func @transform_5(%arg0: i32) -> (i32, i32) {
    %c0_i32 = arith.constant 0 : i32
    %c0_i32_0 = arith.constant 0 : i32
    %c0_i32_1 = arith.constant 0 : i32
    return %c0_i32, %c0_i32_0 : i32, i32
  }
  func.func @transform_6(%arg0: i32) -> i32 {
    %c0_i32 = arith.constant 0 : i32
    %c0_i32_0 = arith.constant 0 : i32
    return %c0_i32 : i32
  }
  func.func @transform_7(%arg0: i32) -> (i32, i32) {
    %c0_i32 = arith.constant 0 : i32
    %c0_i32_0 = arith.constant 0 : i32
    return %arg0, %c0_i32 : i32, i32
  }
}

</mosaic_0001>

<bundles_post_ra>
// kernel: tpu_custom_call.1
= control target key start
LH: loop header
LB: loop body
LE: loop exit
PB: predicated region body
PF: predicated region fallthrough
CT: control target
= control target key end

     0   :  { %13 = vsyncpa [#allocation4], 0  ;;  %s1960_s0 = inlined_call_operand.hbm [shape: bf16[128,128], index: 0, kind: input, shape index: {}]   ;;  %s1961_s1 = inlined_call_operand.hbm [shape: bf16[128,256], index: 1, kind: input, shape index: {}]   ;;  %s1962_s2 = inlined_call_operand.vmem [shape: f32[1,256], index: 2, kind: input, shape index: {}]   ;;  %s1963_s3 = inlined_call_operand.hbm [shape: bf16[256,256], index: 3, kind: input, shape index: {}]   ;;  %s1964_s4 = inlined_call_operand.vmem [shape: f32[1,256], index: 4, kind: input, shape index: {}]   ;;  %s1965_s5 = inlined_call_operand.vmem [shape: f32[1,256], index: 5, kind: input, shape index: {}]   ;;  %s1966_s6 = inlined_call_operand.<no memory space> [shape: f32[1], index: 6, kind: input, shape index: {}]   ;;  %s1967_s7 = inlined_call_operand.vmem [shape: f32[128,1], index: 7, kind: output, shape index: {}]  }
   0x1   :  { %14 = vsyncpa [#allocation6], 0  ;;  %s32_s26 = sshll.u32 %s1961_s1, 4  ;;  %s1702_s27 = smov [#allocation5]   ;;  %s33_s26 = int_to_ptr.hbm [resolvable:$true] %s32_s26 }
   0x2   :  { %s34_s28 = sshll.u32 %s1702_s27, 4  ;;  %s19_s8 = sshll.u32 %s1960_s0, 4  ;;  %s35_s28 = int_to_ptr.vmem [resolvable:$true] %s34_s28  ;;  %s20_s8 = int_to_ptr.hbm [resolvable:$true] %s19_s8 }
   0x3   :  { %s1703_s9 = smov 128   ;;  %s1704_s10 = smov 8  }
   0x4   :  { %40 = dma.hbm_to_vmem [thread:$0]  %s33_s26, 2048, %s35_s28, [#allocation6], %s1703_s9, %s1703_s9, %s1704_s10  }
   0x5   :  { %s1705_s11 = smov [#allocation3]   ;;  %s1706_s13 = smov 64  }
   0x6   :  { %s21_s12 = sshll.u32 %s1705_s11, 4  ;;  %s1707_s14 = smov 4   ;;  %s22_s12 = int_to_ptr.vmem [resolvable:$true] %s21_s12 }
   0x7   :  { %27 = dma.hbm_to_vmem [thread:$0]  %s20_s8, 1024, %s22_s12, [#allocation4], %s1706_s13, %s1706_s13, %s1707_s14  }
   0x8   :  { %s47_s16 = sshll.u32 %s1963_s3, 4  ;;  %s1708_s17 = smov [#allocation7]   ;;  %s48_s16 = int_to_ptr.hbm [resolvable:$true] %s47_s16 }
   0x9   :  { %s49_s18 = sshll.u32 %s1708_s17, 4  ;;  %s50_s18 = int_to_ptr.vmem [resolvable:$true] %s49_s18 }
   0xa   :  { %55 = dma.hbm_to_vmem [thread:$0]  %s48_s16, 4096, %s50_s18, [#allocation6], %s1703_s9, %s1703_s9, %s1704_s10  }
   0xb   :  { %1698 = dma.done.wait [#allocation4], 1024  }
   0xc   :  { %1699 = vsyncadd [#allocation4], 4294966272 }
   0xd   :  { %1700 = dma.done.wait [#allocation6], 6144  }
   0xe   :  { %1701 = vsyncadd [#allocation6], 4294961152  ;;  %v1333_v0 = vld [vmem:[#allocation5 + $0x70] sm:$0xf]  ;;  %v1506_v1 = vld [vmem:[#allocation5 + $0x74] sm:$0xf0] }
   0xf   :  { %v1505_v2 = vld [vmem:[#allocation5 + $0x74] sm:$0xf]  ;;  %v1334_v3 = vor.u32 %v1506_v1, %v1333_v0  ;;  %v1335_v4 = vld [vmem:[#allocation5 + $0x78] sm:$0xf0]  ;;  %v1325_v5 = vld [vmem:[#allocation5 + $0x60] sm:$0xf] }
  0x10   :  { %v1504_v6 = vld [vmem:[#allocation5 + $0x64] sm:$0xf0]  ;;  %v1338_v7 = vor.u32 %v1505_v2, %v1335_v4  ;;  %v1503_v8 = vld [vmem:[#allocation5 + $0x64] sm:$0xf]  ;;  %v1327_v9 = vld [vmem:[#allocation5 + $0x68] sm:$0xf0] }
  0x11   :  { %240 = vmatpush.bf16.msra.mxu0 %v1334_v3  ;;  %v1326_v10 = vor.u32 %v1504_v6, %v1325_v5  ;;  %1539 = vmatpush.bf16.msra.mxu2 %v1334_v3  ;;  %v1330_v11 = vor.u32 %v1503_v8, %v1327_v9  ;;  %v1317_v12 = vld [vmem:[#allocation5 + $0x50] sm:$0xf]  ;;  %v1502_v13 = vld [vmem:[#allocation5 + $0x54] sm:$0xf0]  ;;  %v1501_v14 = vld [vmem:[#allocation5 + $0x54] sm:$0xf] }
  0x12   :  { %289 = vmatpush.bf16.msra.mxu1 %v1338_v7  ;;  %1547 = vmatpush.bf16.msra.mxu3 %v1338_v7  ;;  %v1319_v15 = vld [vmem:[#allocation5 + $0x58] sm:$0xf0]  ;;  %v1318_v16 = vor.u32 %v1502_v13, %v1317_v12  ;;  %v1309_v18 = vld [vmem:[#allocation5 + $0x40] sm:$0xf]  ;;  %v1500_v19 = vld [vmem:[#allocation5 + $0x44] sm:$0xf0] }
  0x13   :  { %v1322_v17 = vor.u32 %v1501_v14, %v1319_v15  ;;  %v1499_v20 = vld [vmem:[#allocation5 + $0x44] sm:$0xf]  ;;  %v1311_v21 = vld [vmem:[#allocation5 + $0x48] sm:$0xf0]  ;;  %v1310_v22 = vor.u32 %v1500_v19, %v1309_v18  ;;  %v1301_v24 = vld [vmem:[#allocation5 + $0x30] sm:$0xf] }
  0x14   :  { %v1314_v23 = vor.u32 %v1499_v20, %v1311_v21  ;;  %v1498_v25 = vld [vmem:[#allocation5 + $0x34] sm:$0xf0]  ;;  %v1497_v26 = vld [vmem:[#allocation5 + $0x34] sm:$0xf]  ;;  %v1303_v27 = vld [vmem:[#allocation5 + $0x38] sm:$0xf0] }
  0x15   :  { %241 = vmatpush.bf16.msra.mxu0 %v1326_v10  ;;  %1540 = vmatpush.bf16.msra.mxu2 %v1326_v10  ;;  %v1302_v28 = vor.u32 %v1498_v25, %v1301_v24  ;;  %v1306_v29 = vor.u32 %v1497_v26, %v1303_v27  ;;  %v1293_v30 = vld [vmem:[#allocation5 + $0x20] sm:$0xf]  ;;  %v1496_v31 = vld [vmem:[#allocation5 + $0x24] sm:$0xf0]  ;;  %v1495_v32 = vld [vmem:[#allocation5 + $0x24] sm:$0xf] }
  0x16   :  { %290 = vmatpush.bf16.msra.mxu1 %v1330_v11  ;;  %1548 = vmatpush.bf16.msra.mxu3 %v1330_v11  ;;  %v1295_v33 = vld [vmem:[#allocation5 + $0x28] sm:$0xf0]  ;;  %v1294_v34 = vor.u32 %v1496_v31, %v1293_v30  ;;  %v1285_v36 = vld [vmem:[#allocation5 + $0x10] sm:$0xf]  ;;  %v1494_v37 = vld [vmem:[#allocation5 + $0x14] sm:$0xf0] }
  0x17   :  { %v1298_v35 = vor.u32 %v1495_v32, %v1295_v33  ;;  %v1493_v38 = vld [vmem:[#allocation5 + $0x14] sm:$0xf]  ;;  %v1287_v39 = vld [vmem:[#allocation5 + $0x18] sm:$0xf0]  ;;  %v1286_v40 = vor.u32 %v1494_v37, %v1285_v36  ;;  %v1277_v42 = vld [vmem:[#allocation5] sm:$0xf] }
  0x18   :  { %v1290_v41 = vor.u32 %v1493_v38, %v1287_v39  ;;  %v1492_v43 = vld [vmem:[#allocation5 + $0x4] sm:$0xf0]  ;;  %v1491_v44 = vld [vmem:[#allocation5 + $0x4] sm:$0xf]  ;;  %v1279_v45 = vld [vmem:[#allocation5 + $0x8] sm:$0xf0] }
  0x19   :  { %242 = vmatpush.bf16.msra.mxu0 %v1318_v16  ;;  %1541 = vmatpush.bf16.msra.mxu2 %v1318_v16  ;;  %v1278_v46 = vor.u32 %v1492_v43, %v1277_v42  ;;  %v1282_v47 = vor.u32 %v1491_v44, %v1279_v45  ;;  %v1483_v48 = vld [vmem:[#allocation3] sm:$0xff]  ;;  %v1484_v49 = vld [vmem:[#allocation3 + $0x8] sm:$0xff]  ;;  %v1397_v51 = vld [vmem:[#allocation7 + $0x70] sm:$0xf]  ;;  %vm1220_vm2 = vcmask 7168  }
  0x1a   :  { %291 = vmatpush.bf16.msra.mxu1 %v1322_v17  ;;  %1549 = vmatpush.bf16.msra.mxu3 %v1322_v17  ;;  %v1487_v50 = vld [vmem:[#allocation3 + $0x20] sm:$0xff]  ;;  %v1522_v52 = vld [vmem:[#allocation7 + $0x74] sm:$0xf0]  ;;  %v1461_v53 = vld [vmem:[#allocation7 + $0xf0] sm:$0xf] }
  0x1b   :  { %v1538_v54 = vld [vmem:[#allocation7 + $0xf4] sm:$0xf0]  ;;  %v1398_v55 = vor.u32 %v1522_v52, %v1397_v51  ;;  %v1521_v57 = vld [vmem:[#allocation7 + $0x74] sm:$0xf]  ;;  %v1399_v58 = vld [vmem:[#allocation7 + $0x78] sm:$0xf0] }
  0x1c   :  { %v1462_v56 = vor.u32 %v1538_v54, %v1461_v53  ;;  %v1402_v59 = vor.u32 %v1521_v57, %v1399_v58  ;;  %v1389_v60 = vld [vmem:[#allocation7 + $0x60] sm:$0xf]  ;;  %v1520_v61 = vld [vmem:[#allocation7 + $0x64] sm:$0xf0]  ;;  %v1537_v62 = vld [vmem:[#allocation7 + $0xf4] sm:$0xf] }
  0x1d   :  { %243 = vmatpush.bf16.msra.mxu0 %v1310_v22  ;;  %1542 = vmatpush.bf16.msra.mxu2 %v1310_v22  ;;  %v1390_v63 = vor.u32 %v1520_v61, %v1389_v60  ;;  %v1463_v0 = vld [vmem:[#allocation7 + $0xf8] sm:$0xf0]  ;;  %v1453_v1 = vld [vmem:[#allocation7 + $0xe0] sm:$0xf]  ;;  %v1536_v2 = vld [vmem:[#allocation7 + $0xe4] sm:$0xf0] }
  0x1e   :  { %292 = vmatpush.bf16.msra.mxu1 %v1314_v23  ;;  %1550 = vmatpush.bf16.msra.mxu3 %v1314_v23  ;;  %v1466_v3 = vor.u32 %v1537_v62, %v1463_v0  ;;  %v1454_v4 = vor.u32 %v1536_v2, %v1453_v1  ;;  %v1519_v5 = vld [vmem:[#allocation7 + $0x64] sm:$0xf]  ;;  %v1391_v6 = vld [vmem:[#allocation7 + $0x68] sm:$0xf0]  ;;  %v1381_v7 = vld [vmem:[#allocation7 + $0x50] sm:$0xf] }
  0x1f   :  { %v1394_v8 = vor.u32 %v1519_v5, %v1391_v6  ;;  %v1518_v9 = vld [vmem:[#allocation7 + $0x54] sm:$0xf0]  ;;  %v1535_v10 = vld [vmem:[#allocation7 + $0xe4] sm:$0xf]  ;;  %v1455_v11 = vld [vmem:[#allocation7 + $0xe8] sm:$0xf0] }
  0x20   :  { %v1458_v12 = vor.u32 %v1535_v10, %v1455_v11  ;;  %v1445_v13 = vld [vmem:[#allocation7 + $0xd0] sm:$0xf]  ;;  %v1534_v14 = vld [vmem:[#allocation7 + $0xd4] sm:$0xf0]  ;;  %v1382_v15 = vor.u32 %v1518_v9, %v1381_v7  ;;  %v1488_v18 = vld [vmem:[#allocation3 + $0x28] sm:$0xff] }
  0x21   :  { %244 = vmatpush.bf16.msra.mxu0 %v1302_v28  ;;  %1543 = vmatpush.bf16.msra.mxu2 %v1302_v28  ;;  %v1446_v16 = vor.u32 %v1534_v14, %v1445_v13  ;;  %v1485_v17 = vld [vmem:[#allocation3 + $0x10] sm:$0xff]  ;;  %v1383_v20 = vld [vmem:[#allocation7 + $0x58] sm:$0xf0]  ;;  %v1373_v21 = vld [vmem:[#allocation7 + $0x40] sm:$0xf] }
  0x22   :  { %293 = vmatpush.bf16.msra.mxu1 %v1306_v29  ;;  %1551 = vmatpush.bf16.msra.mxu3 %v1306_v29  ;;  %v1517_v19 = vld [vmem:[#allocation7 + $0x54] sm:$0xf]  ;;  %v1516_v23 = vld [vmem:[#allocation7 + $0x44] sm:$0xf0]  ;;  %v1447_v25 = vld [vmem:[#allocation7 + $0xd8] sm:$0xf0] }
  0x23   :  { %v1386_v22 = vor.u32 %v1517_v19, %v1383_v20  ;;  %v1533_v24 = vld [vmem:[#allocation7 + $0xd4] sm:$0xf]  ;;  %v1374_v26 = vor.u32 %v1516_v23, %v1373_v21  ;;  %v1437_v28 = vld [vmem:[#allocation7 + $0xc0] sm:$0xf]  ;;  %v1532_v29 = vld [vmem:[#allocation7 + $0xc4] sm:$0xf0] }
  0x24   :  { %v1450_v27 = vor.u32 %v1533_v24, %v1447_v25  ;;  %v1515_v30 = vld [vmem:[#allocation7 + $0x44] sm:$0xf]  ;;  %v1438_v31 = vor.u32 %v1532_v29, %v1437_v28  ;;  %v1375_v32 = vld [vmem:[#allocation7 + $0x48] sm:$0xf0]  ;;  %v1365_v33 = vld [vmem:[#allocation7 + $0x30] sm:$0xf] }
  0x25   :  { %245 = vmatpush.bf16.msra.mxu0 %v1294_v34  ;;  %1544 = vmatpush.bf16.msra.mxu2 %v1294_v34  ;;  %v1514_v34 = vld [vmem:[#allocation7 + $0x34] sm:$0xf0]  ;;  %v1531_v37 = vld [vmem:[#allocation7 + $0xc4] sm:$0xf]  ;;  %v1439_v38 = vld [vmem:[#allocation7 + $0xc8] sm:$0xf0] }
  0x26   :  { %294 = vmatpush.bf16.msra.mxu1 %v1298_v35  ;;  %1552 = vmatpush.bf16.msra.mxu3 %v1298_v35  ;;  %v1378_v35 = vor.u32 %v1515_v30, %v1375_v32  ;;  %v1366_v36 = vor.u32 %v1514_v34, %v1365_v33  ;;  %v1429_v39 = vld [vmem:[#allocation7 + $0xb0] sm:$0xf]  ;;  %v1513_v42 = vld [vmem:[#allocation7 + $0x34] sm:$0xf]  ;;  %v1367_v43 = vld [vmem:[#allocation7 + $0x38] sm:$0xf0] }
  0x27   :  { %v1357_v45 = vld [vmem:[#allocation7 + $0x20] sm:$0xf]  ;;  %v1528_v51 = vld [vmem:[#allocation7 + $0xa4] sm:$0xf0]  ;;  %v1511_v54 = vld [vmem:[#allocation7 + $0x24] sm:$0xf] }
  0x28   :  { %v1349_v58 = vld [vmem:[#allocation7 + $0x10] sm:$0xf]  ;;  %v1527_v60 = vld [vmem:[#allocation7 + $0xa4] sm:$0xf]  ;;  %v1423_v61 = vld [vmem:[#allocation7 + $0xa8] sm:$0xf0] }
  0x29   :  { %246 = vmatpush.bf16.msra.mxu0 %v1286_v40  ;;  %1545 = vmatpush.bf16.msra.mxu2 %v1286_v40  ;;  %v1442_v40 = vor.u32 %v1531_v37, %v1439_v38  ;;  %v1426_v1 = vor.u32 %v1527_v60, %v1423_v61  ;;  %v1490_v2 = vld [vmem:[#allocation3 + $0x38] sm:$0xff]  ;;  %v1509_v5 = vld [vmem:[#allocation7 + $0x14] sm:$0xf]  ;;  %v1508_v9 = vld [vmem:[#allocation7 + $0x4] sm:$0xf0] }
  0x2a   :  { %295 = vmatpush.bf16.msra.mxu1 %v1290_v41  ;;  %1553 = vmatpush.bf16.msra.mxu3 %v1290_v41  ;;  %v1530_v41 = vld [vmem:[#allocation7 + $0xb4] sm:$0xf0]  ;;  %v1351_v7 = vld [vmem:[#allocation7 + $0x18] sm:$0xf0]  ;;  %v1343_v19 = vld [vmem:[#allocation7 + $0x8] sm:$0xf0] }
  0x2b   :  { %v1430_v44 = vor.u32 %v1530_v41, %v1429_v39  ;;  %v1354_v10 = vor.u32 %v1509_v5, %v1351_v7  ;;  %v1415_v13 = vld [vmem:[#allocation7 + $0x98] sm:$0xf0]  ;;  %v1523_v20 = vld [vmem:[#allocation7 + $0x84] sm:$0xf]  ;;  %v1407_v21 = vld [vmem:[#allocation7 + $0x88] sm:$0xf0] }
  0x2c   :  { %v1410_v23 = vor.u32 %v1523_v20, %v1407_v21  ;;  %v106_v24 = vld [vmem:[%s1962_s2] sm:$0x3] }
  0x2d   :  { %247 = vmatpush.bf16.msra.mxu0 %v1278_v46  ;;  %1546 = vmatpush.bf16.msra.mxu2 %v1278_v46  ;;  %v1512_v46 = vld [vmem:[#allocation7 + $0x24] sm:$0xf0]  ;;  %v1763_v28 = vperm.slane %v106_v24, 1 }
  0x2e   :  { %296 = vmatpush.bf16.msra.mxu1 %v1282_v47  ;;  %1554 = vmatpush.bf16.msra.mxu3 %v1282_v47  ;;  %v1529_v47 = vld [vmem:[#allocation7 + $0xb4] sm:$0xf]  ;;  %v1358_v52 = vor.u32 %v1512_v46, %v1357_v45 }
  0x30   :  { %248 = vmatmul.bf16.vlgmr.msra.gmra.mxu0 %v1483_v48  ;;  %268 = vmatmul.bf16.vlgmr.msra.gmra.mxu2 %v1487_v50 }
  0x31   :  { %297 = vmatmul.bf16.vlgmr.msra.gmra.mxu1 %v1483_v48  ;;  %317 = vmatmul.bf16.vlgmr.msra.gmra.mxu3 %v1487_v50  ;;  %v1370_v48 = vor.u32 %v1513_v42, %v1367_v43  ;;  %v1421_v50 = vld [vmem:[#allocation7 + $0xa0] sm:$0xf] }
  0x32   :  { %584 = vmatpush.bf16.msrb.mxu2 %v1398_v55  ;;  %633 = vmatpush.bf16.msrb.mxu3 %v1462_v56  ;;  %v1359_v55 = vld [vmem:[#allocation7 + $0x28] sm:$0xf0]  ;;  %v1486_v56 = vld [vmem:[#allocation3 + $0x18] sm:$0xff]  ;;  %v1422_v57 = vor.u32 %v1528_v51, %v1421_v50 }
  0x33   :  { %682 = vmatpush.bf16.msrb.mxu0 %v1402_v59  ;;  %731 = vmatpush.bf16.msrb.mxu1 %v1466_v3  ;;  %v1510_v59 = vld [vmem:[#allocation7 + $0x14] sm:$0xf0]  ;;  %v1362_v62 = vor.u32 %v1511_v54, %v1359_v55  ;;  %v1413_v3 = vld [vmem:[#allocation7 + $0x90] sm:$0xf] }
  0x34   :  { %v1350_v0 = vor.u32 %v1510_v59, %v1349_v58 }
  0x36   :  { %585 = vmatpush.bf16.msrb.mxu2 %v1390_v63  ;;  %634 = vmatpush.bf16.msrb.mxu3 %v1454_v4  ;;  %v1489_v63 = vld [vmem:[#allocation3 + $0x30] sm:$0xff]  ;;  %v1526_v4 = vld [vmem:[#allocation7 + $0x94] sm:$0xf0] }
  0x37   :  { %683 = vmatpush.bf16.msrb.mxu0 %v1394_v8  ;;  %732 = vmatpush.bf16.msrb.mxu1 %v1458_v12  ;;  %v1414_v6 = vor.u32 %v1526_v4, %v1413_v3  ;;  %v1341_v8 = vld [vmem:[#allocation7] sm:$0xf]  ;;  %v1525_v12 = vld [vmem:[#allocation7 + $0x94] sm:$0xf] }
  0x38   :  { %v1342_v11 = vor.u32 %v1508_v9, %v1341_v8  ;;  %v1418_v14 = vor.u32 %v1525_v12, %v1415_v13 }
  0x3a   :  { %586 = vmatpush.bf16.msrb.mxu2 %v1382_v15  ;;  %635 = vmatpush.bf16.msrb.mxu3 %v1446_v16  ;;  %v1405_v15 = vld [vmem:[#allocation7 + $0x80] sm:$0xf]  ;;  %v1524_v16 = vld [vmem:[#allocation7 + $0x84] sm:$0xf0] }
  0x3b   :  { %684 = vmatpush.bf16.msrb.mxu0 %v1386_v22  ;;  %733 = vmatpush.bf16.msrb.mxu1 %v1450_v27  ;;  %v1761_v27 = vperm.slane %v106_v24, 0 }
  0x3e   :  { %587 = vmatpush.bf16.msrb.mxu2 %v1374_v26  ;;  %636 = vmatpush.bf16.msrb.mxu3 %v1438_v31 }
  0x3f   :  { %685 = vmatpush.bf16.msrb.mxu0 %v1378_v35  ;;  %734 = vmatpush.bf16.msrb.mxu1 %v1442_v40 }
  0x40   :  { %253 = vmatmul.bf16.gmra.mxu0 %v1484_v49  ;;  %273 = vmatmul.bf16.gmra.mxu2 %v1488_v18 }
  0x41   :  { %302 = vmatmul.bf16.gmra.mxu1 %v1484_v49  ;;  %322 = vmatmul.bf16.gmra.mxu3 %v1488_v18  ;;  %v1431_v49 = vld [vmem:[#allocation7 + $0xb8] sm:$0xf0]  ;;  %v1406_v18 = vor.u32 %v1524_v16, %v1405_v15 }
  0x42   :  { %588 = vmatpush.bf16.msrb.mxu2 %v1366_v36  ;;  %v1434_v53 = vor.u32 %v1529_v47, %v1431_v49  ;;  %637 = vmatpush.bf16.msrb.mxu3 %v1430_v44 }
  0x43   :  { %686 = vmatpush.bf16.msrb.mxu0 %v1370_v48 }
  0x44   :  { %735 = vmatpush.bf16.msrb.mxu1 %v1434_v53 }
  0x46   :  { %589 = vmatpush.bf16.msrb.mxu2 %v1358_v52  ;;  %638 = vmatpush.bf16.msrb.mxu3 %v1422_v57 }
  0x47   :  { %687 = vmatpush.bf16.msrb.mxu0 %v1362_v62 }
  0x48   :  { %736 = vmatpush.bf16.msrb.mxu1 %v1426_v1 }
  0x4a   :  { %590 = vmatpush.bf16.msrb.mxu2 %v1350_v0  ;;  %639 = vmatpush.bf16.msrb.mxu3 %v1414_v6 }
  0x4b   :  { %688 = vmatpush.bf16.msrb.mxu0 %v1354_v10 }
  0x4c   :  { %737 = vmatpush.bf16.msrb.mxu1 %v1418_v14 }
  0x4e   :  { %591 = vmatpush.bf16.msrb.mxu2 %v1342_v11  ;;  %640 = vmatpush.bf16.msrb.mxu3 %v1406_v18 }
  0x50   :  { %258 = vmatmul.bf16.gmra.mxu0 %v1485_v17  ;;  %278 = vmatmul.bf16.gmra.mxu2 %v1489_v63 }
  0x51   :  { %307 = vmatmul.bf16.gmra.mxu1 %v1485_v17  ;;  %327 = vmatmul.bf16.gmra.mxu3 %v1489_v63  ;;  %v1507_v17 = vld [vmem:[#allocation7 + $0x4] sm:$0xf] }
  0x52   :  { %v1346_v22 = vor.u32 %v1507_v17, %v1343_v19  ;;  %738 = vmatpush.bf16.msrb.mxu1 %v1410_v23 }
  0x54   :  { %689 = vmatpush.bf16.msrb.mxu0 %v1346_v22 }
  0x60   :  { %263 = vmatmul.bf16.gmra.mxu0 %v1486_v56  ;;  %283 = vmatmul.bf16.gmra.mxu2 %v1490_v2 }
  0x61   :  { %312 = vmatmul.bf16.gmra.mxu1 %v1486_v56  ;;  %332 = vmatmul.bf16.gmra.mxu3 %v1490_v2 }
  0xad   :  { %v249_v25 = vpop.f32.mrf.mxu0 }
  0xae   :  { %v298_v26 = vpop.f32.mrf.mxu1  ;;  %v250_v29 = vadd.f32 %v249_v25, %v1761_v27 }
  0xaf   :  { %v299_v30 = vadd.f32 %v298_v26, %v1763_v28 }
  0xb0   :  { %v338_v35 = vmax.f32 %v250_v29, 0.0 }
  0xb1   :  { %v339_v37 = vmax.f32 %v299_v30, 0.0 }
  0xb3   :  { %v269_v3 = vpop.f32.mrf.mxu2 }
  0xb4   :  { %v318_v5 = vpop.f32.mrf.mxu3  ;;  %v270_v25 = vadd.f32 %v269_v3, %v1761_v27 }
  0xb5   :  { %v251_v31 = vpop.f32.mrf.mxu0  ;;  %v319_v29 = vadd.f32 %v318_v5, %v1763_v28 }
  0xb6   :  { %v252_v32 = vadd.f32 %v251_v31, %v1761_v27  ;;  %v300_v33 = vpop.f32.mrf.mxu1  ;;  %v354_v31 = vmax.f32 %v270_v25, 0.0 }
  0xb7   :  { %v301_v34 = vadd.f32 %v300_v33, %v1763_v28  ;;  %v355_v33 = vmax.f32 %v319_v29, 0.0 }
  0xb8   :  { %v340_v36 = vmax.f32 %v252_v32, 0.0 }
  0xb9   :  { %v341_v38 = vmax.f32 %v301_v34, 0.0 }
  0xba   :  { %v370_v39 = vpack.c.bf16 %v340_v36, %v338_v35 }
  0xbb   :  { %v371_v40 = vpack.c.bf16 %v341_v38, %v339_v37  ;;  %v271_v9 = vpop.f32.mrf.mxu2 }
  0xbc   :  { %592 = vmatmul.bf16.vlgmr.msrb.gmra.mxu2 %v370_v39  ;;  %690 = vmatmul.bf16.vlgmr.msrb.gmra.mxu0 %v370_v39  ;;  %v320_v11 = vpop.f32.mrf.mxu3  ;;  %v272_v26 = vadd.f32 %v271_v9, %v1761_v27 }
  0xbd   :  { %641 = vmatmul.bf16.vlgmr.msrb.gmra.mxu3 %v371_v40  ;;  %739 = vmatmul.bf16.vlgmr.msrb.gmra.mxu1 %v371_v40  ;;  %v254_v41 = vpop.f32.mrf.mxu0  ;;  %v321_v30 = vadd.f32 %v320_v11, %v1763_v28 }
  0xbe   :  { %v303_v42 = vpop.f32.mrf.mxu1  ;;  %v255_v43 = vadd.f32 %v254_v41, %v1761_v27  ;;  %v356_v32 = vmax.f32 %v272_v26, 0.0 }
  0xbf   :  { %v304_v44 = vadd.f32 %v303_v42, %v1763_v28  ;;  %v357_v34 = vmax.f32 %v321_v30, 0.0 }
  0xc0   :  { %v342_v49 = vmax.f32 %v255_v43, 0.0  ;;  %v378_v37 = vpack.c.bf16 %v356_v32, %v354_v31 }
  0xc1   :  { %v343_v51 = vmax.f32 %v304_v44, 0.0  ;;  %v379_v38 = vpack.c.bf16 %v357_v34, %v355_v33 }
  0xc3   :  { %v274_v23 = vpop.f32.mrf.mxu2 }
  0xc4   :  { %v323_v24 = vpop.f32.mrf.mxu3  ;;  %v275_v40 = vadd.f32 %v274_v23, %v1761_v27 }
  0xc5   :  { %v256_v45 = vpop.f32.mrf.mxu0  ;;  %v324_v43 = vadd.f32 %v323_v24, %v1763_v28 }
  0xc6   :  { %v257_v46 = vadd.f32 %v256_v45, %v1761_v27  ;;  %v305_v47 = vpop.f32.mrf.mxu1  ;;  %v358_v45 = vmax.f32 %v275_v40, 0.0 }
  0xc7   :  { %v306_v48 = vadd.f32 %v305_v47, %v1763_v28  ;;  %v359_v47 = vmax.f32 %v324_v43, 0.0 }
  0xc8   :  { %v344_v50 = vmax.f32 %v257_v46, 0.0 }
  0xc9   :  { %v345_v52 = vmax.f32 %v306_v48, 0.0 }
  0xca   :  { %v372_v53 = vpack.c.bf16 %v344_v50, %v342_v49 }
  0xcb   :  { %v373_v54 = vpack.c.bf16 %v345_v52, %v343_v51  ;;  %v276_v35 = vpop.f32.mrf.mxu2 }
  0xcc   :  { %597 = vmatmul.bf16.gmra.mxu2 %v372_v53  ;;  %695 = vmatmul.bf16.gmra.mxu0 %v372_v53  ;;  %v325_v36 = vpop.f32.mrf.mxu3  ;;  %v277_v41 = vadd.f32 %v276_v35, %v1761_v27 }
  0xcd   :  { %646 = vmatmul.bf16.gmra.mxu3 %v373_v54  ;;  %744 = vmatmul.bf16.gmra.mxu1 %v373_v54  ;;  %v259_v55 = vpop.f32.mrf.mxu0  ;;  %v326_v44 = vadd.f32 %v325_v36, %v1763_v28 }
  0xce   :  { %v308_v56 = vpop.f32.mrf.mxu1  ;;  %v260_v57 = vadd.f32 %v259_v55, %v1761_v27  ;;  %v360_v46 = vmax.f32 %v277_v41, 0.0 }
  0xcf   :  { %v309_v58 = vadd.f32 %v308_v56, %v1763_v28  ;;  %v361_v48 = vmax.f32 %v326_v44, 0.0 }
  0xd0   :  { %v346_v63 = vmax.f32 %v260_v57, 0.0  ;;  %v380_v49 = vpack.c.bf16 %v360_v46, %v358_v45 }
  0xd1   :  { %v347_v1 = vmax.f32 %v309_v58, 0.0  ;;  %v381_v50 = vpack.c.bf16 %v361_v48, %v359_v47 }
  0xd3   :  { %v279_v39 = vpop.f32.mrf.mxu2 }
  0xd4   :  { %v328_v42 = vpop.f32.mrf.mxu3  ;;  %v280_v53 = vadd.f32 %v279_v39, %v1761_v27 }
  0xd5   :  { %v261_v59 = vpop.f32.mrf.mxu0  ;;  %v329_v55 = vadd.f32 %v328_v42, %v1763_v28 }
  0xd6   :  { %v262_v60 = vadd.f32 %v261_v59, %v1761_v27  ;;  %v310_v61 = vpop.f32.mrf.mxu1  ;;  %v362_v58 = vmax.f32 %v280_v53, 0.0 }
  0xd7   :  { %v311_v62 = vadd.f32 %v310_v61, %v1763_v28  ;;  %v363_v61 = vmax.f32 %v329_v55, 0.0 }
  0xd8   :  { %v348_v0 = vmax.f32 %v262_v60, 0.0 }
  0xd9   :  { %v349_v2 = vmax.f32 %v311_v62, 0.0 }
  0xda   :  { %v374_v4 = vpack.c.bf16 %v348_v0, %v346_v63 }
  0xdb   :  { %v375_v6 = vpack.c.bf16 %v349_v2, %v347_v1  ;;  %v281_v51 = vpop.f32.mrf.mxu2 }
  0xdc   :  { %602 = vmatmul.bf16.gmra.mxu2 %v374_v4  ;;  %700 = vmatmul.bf16.gmra.mxu0 %v374_v4  ;;  %v330_v52 = vpop.f32.mrf.mxu3  ;;  %v282_v54 = vadd.f32 %v281_v51, %v1761_v27 }
  0xdd   :  { %651 = vmatmul.bf16.gmra.mxu3 %v375_v6  ;;  %749 = vmatmul.bf16.gmra.mxu1 %v375_v6  ;;  %v264_v7 = vpop.f32.mrf.mxu0  ;;  %v331_v56 = vadd.f32 %v330_v52, %v1763_v28 }
  0xde   :  { %v313_v8 = vpop.f32.mrf.mxu1  ;;  %v265_v10 = vadd.f32 %v264_v7, %v1761_v27  ;;  %v364_v59 = vmax.f32 %v282_v54, 0.0 }
  0xdf   :  { %v314_v12 = vadd.f32 %v313_v8, %v1763_v28  ;;  %v365_v62 = vmax.f32 %v331_v56, 0.0 }
  0xe0   :  { %v350_v17 = vmax.f32 %v265_v10, 0.0  ;;  %v382_v63 = vpack.c.bf16 %v364_v59, %v362_v58 }
  0xe1   :  { %v351_v19 = vmax.f32 %v314_v12, 0.0  ;;  %v383_v0 = vpack.c.bf16 %v365_v62, %v363_v61 }
  0xe3   :  { %v284_v57 = vpop.f32.mrf.mxu2 }
  0xe4   :  { %v333_v60 = vpop.f32.mrf.mxu3  ;;  %v285_v3 = vadd.f32 %v284_v57, %v1761_v27 }
  0xe5   :  { %v266_v13 = vpop.f32.mrf.mxu0  ;;  %v334_v5 = vadd.f32 %v333_v60, %v1763_v28 }
  0xe6   :  { %v267_v14 = vadd.f32 %v266_v13, %v1761_v27  ;;  %v315_v15 = vpop.f32.mrf.mxu1  ;;  %v366_v7 = vmax.f32 %v285_v3, 0.0  ;;  %v418_v13 = vld [vmem:[%s1964_s4] sm:$0x3] }
  0xe7   :  { %v316_v16 = vadd.f32 %v315_v15, %v1763_v28  ;;  %v367_v9 = vmax.f32 %v334_v5, 0.0 }
  0xe8   :  { %v352_v18 = vmax.f32 %v267_v14, 0.0  ;;  %v1800_v14 = vperm.slane %v418_v13, 1 }
  0xe9   :  { %v353_v20 = vmax.f32 %v316_v16, 0.0  ;;  %v1803_v16 = vperm.slane %v418_v13, 0 }
  0xea   :  { %v376_v21 = vpack.c.bf16 %v352_v18, %v350_v17  ;;  %v812_v18 = vld [vmem:[%s1965_s5] sm:$0x3] }
  0xeb   :  { %v377_v22 = vpack.c.bf16 %v353_v20, %v351_v19  ;;  %v286_v1 = vpop.f32.mrf.mxu2  ;;  %v1809_v23 = vperm.slane %v812_v18, 1  ;;  %v1812_v30 = vperm.slane %v812_v18, 0 }
  0xec   :  { %607 = vmatmul.bf16.gmra.mxu2 %v376_v21  ;;  %705 = vmatmul.bf16.gmra.mxu0 %v376_v21  ;;  %v335_v2 = vpop.f32.mrf.mxu3  ;;  %v287_v4 = vadd.f32 %v286_v1, %v1761_v27 }
  0xed   :  { %656 = vmatmul.bf16.gmra.mxu3 %v377_v22  ;;  %754 = vmatmul.bf16.gmra.mxu1 %v377_v22  ;;  %v336_v6 = vadd.f32 %v335_v2, %v1763_v28 }
  0xee   :  { %v368_v8 = vmax.f32 %v287_v4, 0.0 }
  0xef   :  { %v369_v10 = vmax.f32 %v336_v6, 0.0 }
  0xf0   :  { %v384_v11 = vpack.c.bf16 %v368_v8, %v366_v7 }
  0xf1   :  { %v385_v12 = vpack.c.bf16 %v369_v10, %v367_v9 }
  0xfc   :  { %612 = vmatmul.bf16.gmra.mxu2 %v378_v37  ;;  %710 = vmatmul.bf16.gmra.mxu0 %v378_v37 }
  0xfd   :  { %661 = vmatmul.bf16.gmra.mxu3 %v379_v38  ;;  %759 = vmatmul.bf16.gmra.mxu1 %v379_v38 }
 0x10c   :  { %617 = vmatmul.bf16.gmra.mxu2 %v380_v49  ;;  %715 = vmatmul.bf16.gmra.mxu0 %v380_v49 }
 0x10d   :  { %666 = vmatmul.bf16.gmra.mxu3 %v381_v50  ;;  %764 = vmatmul.bf16.gmra.mxu1 %v381_v50 }
 0x11c   :  { %622 = vmatmul.bf16.gmra.mxu2 %v382_v63  ;;  %720 = vmatmul.bf16.gmra.mxu0 %v382_v63 }
 0x11d   :  { %671 = vmatmul.bf16.gmra.mxu3 %v383_v0  ;;  %769 = vmatmul.bf16.gmra.mxu1 %v383_v0 }
 0x12c   :  { %627 = vmatmul.bf16.gmra.mxu2 %v384_v11  ;;  %725 = vmatmul.bf16.gmra.mxu0 %v384_v11 }
 0x12d   :  { %676 = vmatmul.bf16.gmra.mxu3 %v385_v12  ;;  %774 = vmatmul.bf16.gmra.mxu1 %v385_v12 }
 0x139   :  { %v691_v27 = vpop.f32.mrf.mxu0 }
 0x13a   :  { %v692_v15 = vadd.f32 %v691_v27, %v1800_v14  ;;  %v740_v28 = vpop.f32.mrf.mxu1 }
 0x13c   :  { %v741_v17 = vadd.f32 %v740_v28, %v692_v15 }
 0x13e   :  { %v781_v24 = vmax.f32 %v741_v17, 0.0 }
 0x13f   :  { %v593_v19 = vpop.f32.mrf.mxu2 }
 0x140   :  { %v594_v20 = vadd.f32 %v593_v19, %v1803_v16  ;;  %v642_v21 = vpop.f32.mrf.mxu3  ;;  %v819_v34 = vmul.f32 %v1809_v23, %v781_v24 }
 0x141   :  { %v693_v22 = vpop.f32.mrf.mxu0 }
 0x142   :  { %v643_v25 = vadd.f32 %v642_v21, %v594_v20  ;;  %v694_v26 = vadd.f32 %v693_v22, %v1800_v14  ;;  %v742_v29 = vpop.f32.mrf.mxu1 }
 0x144   :  { %v780_v31 = vmax.f32 %v643_v25, 0.0  ;;  %v743_v32 = vadd.f32 %v742_v29, %v694_v26 }
 0x146   :  { %v818_v33 = vmul.f32 %v1812_v30, %v780_v31  ;;  %v783_v40 = vmax.f32 %v743_v32, 0.0 }
 0x147   :  { %v595_v35 = vpop.f32.mrf.mxu2 }
 0x148   :  { %v596_v36 = vadd.f32 %v595_v35, %v1803_v16  ;;  %v644_v37 = vpop.f32.mrf.mxu3  ;;  %v850_v38 = vadd.f32 %v819_v34, %v818_v33  ;;  %v821_v45 = vmul.f32 %v1809_v23, %v783_v40 }
 0x149   :  { %v696_v39 = vpop.f32.mrf.mxu0 }
 0x14a   :  { %v645_v41 = vadd.f32 %v644_v37, %v596_v36  ;;  %v697_v42 = vadd.f32 %v696_v39, %v1800_v14  ;;  %v745_v43 = vpop.f32.mrf.mxu1  ;;  %851 = vadd.xlane.f32.xlu0 %v850_v38 }
 0x14c   :  { %v782_v44 = vmax.f32 %v645_v41, 0.0  ;;  %v746_v47 = vadd.f32 %v745_v43, %v697_v42 }
 0x14e   :  { %v820_v46 = vmul.f32 %v1812_v30, %v782_v44  ;;  %v785_v53 = vmax.f32 %v746_v47, 0.0 }
 0x14f   :  { %v598_v48 = vpop.f32.mrf.mxu2 }
 0x150   :  { %v599_v49 = vadd.f32 %v598_v48, %v1803_v16  ;;  %v647_v50 = vpop.f32.mrf.mxu3  ;;  %v853_v51 = vadd.f32 %v821_v45, %v820_v46  ;;  %v823_v60 = vmul.f32 %v1809_v23, %v785_v53 }
 0x151   :  { %v698_v52 = vpop.f32.mrf.mxu0 }
 0x152   :  { %v648_v54 = vadd.f32 %v647_v50, %v599_v49  ;;  %v699_v55 = vadd.f32 %v698_v52, %v1800_v14  ;;  %v747_v56 = vpop.f32.mrf.mxu1  ;;  %854 = vadd.xlane.f32.xlu0 %v853_v51 }
 0x154   :  { %v784_v57 = vmax.f32 %v648_v54, 0.0  ;;  %v748_v58 = vadd.f32 %v747_v56, %v699_v55 }
 0x156   :  { %v822_v59 = vmul.f32 %v1812_v30, %v784_v57  ;;  %v787_v2 = vmax.f32 %v748_v58, 0.0 }
 0x157   :  { %v600_v61 = vpop.f32.mrf.mxu2 }
 0x158   :  { %v601_v62 = vadd.f32 %v600_v61, %v1803_v16  ;;  %v649_v63 = vpop.f32.mrf.mxu3  ;;  %v856_v0 = vadd.f32 %v823_v60, %v822_v59  ;;  %v825_v7 = vmul.f32 %v1809_v23, %v787_v2 }
 0x159   :  { %v701_v1 = vpop.f32.mrf.mxu0 }
 0x15a   :  { %v650_v3 = vadd.f32 %v649_v63, %v601_v62  ;;  %v702_v4 = vadd.f32 %v701_v1, %v1800_v14  ;;  %v750_v5 = vpop.f32.mrf.mxu1  ;;  %857 = vadd.xlane.f32.xlu1 %v856_v0 }
 0x15c   :  { %v786_v6 = vmax.f32 %v650_v3, 0.0  ;;  %v751_v9 = vadd.f32 %v750_v5, %v702_v4 }
 0x15e   :  { %v824_v8 = vmul.f32 %v1812_v30, %v786_v6  ;;  %v789_v15 = vmax.f32 %v751_v9, 0.0 }
 0x15f   :  { %v603_v10 = vpop.f32.mrf.mxu2 }
 0x160   :  { %v604_v11 = vadd.f32 %v603_v10, %v1803_v16  ;;  %v652_v12 = vpop.f32.mrf.mxu3  ;;  %v859_v13 = vadd.f32 %v825_v7, %v824_v8  ;;  %v827_v22 = vmul.f32 %v1809_v23, %v789_v15 }
 0x161   :  { %v703_v27 = vpop.f32.mrf.mxu0 }
 0x162   :  { %v653_v28 = vadd.f32 %v652_v12, %v604_v11  ;;  %v704_v17 = vadd.f32 %v703_v27, %v1800_v14  ;;  %v752_v18 = vpop.f32.mrf.mxu1  ;;  %860 = vadd.xlane.f32.xlu1 %v859_v13 }
 0x164   :  { %v788_v19 = vmax.f32 %v653_v28, 0.0  ;;  %v753_v20 = vadd.f32 %v752_v18, %v704_v17 }
 0x166   :  { %v826_v21 = vmul.f32 %v1812_v30, %v788_v19  ;;  %v791_v32 = vmax.f32 %v753_v20, 0.0 }
 0x167   :  { %v605_v24 = vpop.f32.mrf.mxu2 }
 0x168   :  { %v606_v25 = vadd.f32 %v605_v24, %v1803_v16  ;;  %v654_v26 = vpop.f32.mrf.mxu3  ;;  %v862_v29 = vadd.f32 %v827_v22, %v826_v21  ;;  %v829_v37 = vmul.f32 %v1809_v23, %v791_v32 }
 0x169   :  { %v706_v31 = vpop.f32.mrf.mxu0 }
 0x16a   :  { %v655_v33 = vadd.f32 %v654_v26, %v606_v25  ;;  %v707_v34 = vadd.f32 %v706_v31, %v1800_v14  ;;  %v755_v35 = vpop.f32.mrf.mxu1  ;;  %863 = vadd.xlane.f32.xlu2 %v862_v29 }
 0x16c   :  { %v790_v36 = vmax.f32 %v655_v33, 0.0  ;;  %v756_v39 = vadd.f32 %v755_v35, %v707_v34 }
 0x16e   :  { %v828_v38 = vmul.f32 %v1812_v30, %v790_v36  ;;  %v793_v45 = vmax.f32 %v756_v39, 0.0 }
 0x16f   :  { %v608_v40 = vpop.f32.mrf.mxu2 }
 0x170   :  { %v609_v41 = vadd.f32 %v608_v40, %v1803_v16  ;;  %v657_v42 = vpop.f32.mrf.mxu3  ;;  %v865_v43 = vadd.f32 %v829_v37, %v828_v38  ;;  %v831_v50 = vmul.f32 %v1809_v23, %v793_v45 }
 0x171   :  { %v708_v44 = vpop.f32.mrf.mxu0 }
 0x172   :  { %v658_v46 = vadd.f32 %v657_v42, %v609_v41  ;;  %v709_v47 = vadd.f32 %v708_v44, %v1800_v14  ;;  %v757_v48 = vpop.f32.mrf.mxu1  ;;  %866 = vadd.xlane.f32.xlu2 %v865_v43 }
 0x174   :  { %v792_v49 = vmax.f32 %v658_v46, 0.0  ;;  %v758_v52 = vadd.f32 %v757_v48, %v709_v47 }
 0x176   :  { %v830_v51 = vmul.f32 %v1812_v30, %v792_v49  ;;  %v795_v58 = vmax.f32 %v758_v52, 0.0 }
 0x177   :  { %v610_v53 = vpop.f32.mrf.mxu2 }
 0x178   :  { %v611_v54 = vadd.f32 %v610_v53, %v1803_v16  ;;  %v659_v55 = vpop.f32.mrf.mxu3  ;;  %v868_v56 = vadd.f32 %v831_v50, %v830_v51  ;;  %v833_v63 = vmul.f32 %v1809_v23, %v795_v58 }
 0x179   :  { %v711_v57 = vpop.f32.mrf.mxu0 }
 0x17a   :  { %v660_v59 = vadd.f32 %v659_v55, %v611_v54  ;;  %v712_v60 = vadd.f32 %v711_v57, %v1800_v14  ;;  %v760_v61 = vpop.f32.mrf.mxu1  ;;  %869 = vadd.xlane.f32.xlu0 %v868_v56 }
 0x17c   :  { %v794_v62 = vmax.f32 %v660_v59, 0.0  ;;  %v761_v1 = vadd.f32 %v760_v61, %v712_v60 }
 0x17e   :  { %v832_v0 = vmul.f32 %v1812_v30, %v794_v62  ;;  %v797_v7 = vmax.f32 %v761_v1, 0.0 }
 0x17f   :  { %v613_v2 = vpop.f32.mrf.mxu2 }
 0x180   :  { %v614_v3 = vadd.f32 %v613_v2, %v1803_v16  ;;  %v662_v4 = vpop.f32.mrf.mxu3  ;;  %v871_v5 = vadd.f32 %v833_v63, %v832_v0  ;;  %v835_v12 = vmul.f32 %v1809_v23, %v797_v7 }
 0x181   :  { %v713_v6 = vpop.f32.mrf.mxu0 }
 0x182   :  { %v663_v8 = vadd.f32 %v662_v4, %v614_v3  ;;  %v714_v9 = vadd.f32 %v713_v6, %v1800_v14  ;;  %v762_v10 = vpop.f32.mrf.mxu1  ;;  %872 = vadd.xlane.f32.xlu1 %v871_v5 }
 0x184   :  { %v796_v11 = vmax.f32 %v663_v8, 0.0  ;;  %v763_v27 = vadd.f32 %v762_v10, %v714_v9 }
 0x186   :  { %v834_v13 = vmul.f32 %v1812_v30, %v796_v11  ;;  %v799_v20 = vmax.f32 %v763_v27, 0.0 }
 0x187   :  { %v615_v15 = vpop.f32.mrf.mxu2 }
 0x188   :  { %v616_v28 = vadd.f32 %v615_v15, %v1803_v16  ;;  %v664_v17 = vpop.f32.mrf.mxu3  ;;  %v874_v18 = vadd.f32 %v835_v12, %v834_v13  ;;  %v837_v26 = vmul.f32 %v1809_v23, %v799_v20 }
 0x189   :  { %v716_v19 = vpop.f32.mrf.mxu0 }
 0x18a   :  { %v665_v21 = vadd.f32 %v664_v17, %v616_v28  ;;  %v717_v22 = vadd.f32 %v716_v19, %v1800_v14  ;;  %v765_v24 = vpop.f32.mrf.mxu1  ;;  %875 = vadd.xlane.f32.xlu2 %v874_v18 }
 0x18c   :  { %v798_v25 = vmax.f32 %v665_v21, 0.0  ;;  %v766_v31 = vadd.f32 %v765_v24, %v717_v22 }
 0x18e   :  { %v836_v29 = vmul.f32 %v1812_v30, %v798_v25  ;;  %v801_v37 = vmax.f32 %v766_v31, 0.0 }
 0x18f   :  { %v618_v32 = vpop.f32.mrf.mxu2 }
 0x190   :  { %v619_v33 = vadd.f32 %v618_v32, %v1803_v16  ;;  %v667_v34 = vpop.f32.mrf.mxu3  ;;  %v877_v35 = vadd.f32 %v837_v26, %v836_v29  ;;  %v839_v42 = vmul.f32 %v1809_v23, %v801_v37 }
 0x191   :  { %v718_v36 = vpop.f32.mrf.mxu0 }
 0x192   :  { %v668_v38 = vadd.f32 %v667_v34, %v619_v33  ;;  %v719_v39 = vadd.f32 %v718_v36, %v1800_v14  ;;  %v767_v40 = vpop.f32.mrf.mxu1  ;;  %878 = vadd.xlane.f32.xlu0 %v877_v35 }
 0x194   :  { %v800_v41 = vmax.f32 %v668_v38, 0.0  ;;  %v768_v44 = vadd.f32 %v767_v40, %v719_v39 }
 0x196   :  { %v838_v43 = vmul.f32 %v1812_v30, %v800_v41  ;;  %v803_v50 = vmax.f32 %v768_v44, 0.0 }
 0x197   :  { %v620_v45 = vpop.f32.mrf.mxu2 }
 0x198   :  { %v621_v46 = vadd.f32 %v620_v45, %v1803_v16  ;;  %v669_v47 = vpop.f32.mrf.mxu3  ;;  %v880_v48 = vadd.f32 %v839_v42, %v838_v43  ;;  %v841_v55 = vmul.f32 %v1809_v23, %v803_v50 }
 0x199   :  { %v721_v49 = vpop.f32.mrf.mxu0 }
 0x19a   :  { %v670_v51 = vadd.f32 %v669_v47, %v621_v46  ;;  %v722_v52 = vadd.f32 %v721_v49, %v1800_v14  ;;  %v770_v53 = vpop.f32.mrf.mxu1  ;;  %881 = vadd.xlane.f32.xlu1 %v880_v48 }
 0x19c   :  { %v802_v54 = vmax.f32 %v670_v51, 0.0  ;;  %v771_v57 = vadd.f32 %v770_v53, %v722_v52 }
 0x19e   :  { %v840_v56 = vmul.f32 %v1812_v30, %v802_v54  ;;  %v805_v63 = vmax.f32 %v771_v57, 0.0 }
 0x19f   :  { %v623_v58 = vpop.f32.mrf.mxu2 }
 0x1a0   :  { %v624_v59 = vadd.f32 %v623_v58, %v1803_v16  ;;  %v672_v60 = vpop.f32.mrf.mxu3  ;;  %v883_v61 = vadd.f32 %v841_v55, %v840_v56  ;;  %v843_v4 = vmul.f32 %v1809_v23, %v805_v63 }
 0x1a1   :  { %v723_v62 = vpop.f32.mrf.mxu0 }
 0x1a2   :  { %v673_v0 = vadd.f32 %v672_v60, %v624_v59  ;;  %v724_v1 = vadd.f32 %v723_v62, %v1800_v14  ;;  %v772_v2 = vpop.f32.mrf.mxu1  ;;  %884 = vadd.xlane.f32.xlu2 %v883_v61 }
 0x1a4   :  { %v804_v3 = vmax.f32 %v673_v0, 0.0  ;;  %v773_v6 = vadd.f32 %v772_v2, %v724_v1 }
 0x1a6   :  { %v842_v5 = vmul.f32 %v1812_v30, %v804_v3  ;;  %v807_v12 = vmax.f32 %v773_v6, 0.0 }
 0x1a7   :  { %v625_v7 = vpop.f32.mrf.mxu2 }
 0x1a8   :  { %v626_v8 = vadd.f32 %v625_v7, %v1803_v16  ;;  %v674_v9 = vpop.f32.mrf.mxu3  ;;  %v886_v10 = vadd.f32 %v843_v4, %v842_v5  ;;  %v845_v17 = vmul.f32 %v1809_v23, %v807_v12 }
 0x1a9   :  { %v726_v11 = vpop.f32.mrf.mxu0 }
 0x1aa   :  { %v675_v13 = vadd.f32 %v674_v9, %v626_v8  ;;  %v727_v27 = vadd.f32 %v726_v11, %v1800_v14  ;;  %887 = vadd.xlane.f32.xlu0 %v886_v10  ;;  %v775_v15 = vpop.f32.mrf.mxu1 }
 0x1ac   :  { %v806_v28 = vmax.f32 %v675_v13, 0.0  ;;  %v776_v19 = vadd.f32 %v775_v15, %v727_v27 }
 0x1ae   :  { %v844_v18 = vmul.f32 %v1812_v30, %v806_v28  ;;  %v809_v26 = vmax.f32 %v776_v19, 0.0 }
 0x1af   :  { %v628_v20 = vpop.f32.mrf.mxu2 }
 0x1b0   :  { %v629_v21 = vadd.f32 %v628_v20, %v1803_v16  ;;  %v677_v22 = vpop.f32.mrf.mxu3  ;;  %v889_v24 = vadd.f32 %v845_v17, %v844_v18  ;;  %v847_v34 = vmul.f32 %v1809_v23, %v809_v26 }
 0x1b1   :  { %v728_v25 = vpop.f32.mrf.mxu0 }
 0x1b2   :  { %v678_v29 = vadd.f32 %v677_v22, %v629_v21  ;;  %v729_v31 = vadd.f32 %v728_v25, %v1800_v14  ;;  %890 = vadd.xlane.f32.xlu1 %v889_v24  ;;  %v777_v33 = vpop.f32.mrf.mxu1  ;;  %v1876_v14 = vstv %s1966_s6 }
 0x1b4   :  { %v808_v32 = vmax.f32 %v678_v29, 0.0  ;;  %v778_v36 = vadd.f32 %v777_v33, %v729_v31 }
 0x1b6   :  { %v846_v35 = vmul.f32 %v1812_v30, %v808_v32  ;;  %v811_v41 = vmax.f32 %v778_v36, 0.0 }
 0x1b7   :  { %v630_v37 = vpop.f32.mrf.mxu2 }
 0x1b8   :  { %v631_v38 = vadd.f32 %v630_v37, %v1803_v16  ;;  %v892_v39 = vadd.f32 %v847_v34, %v846_v35  ;;  %v679_v40 = vpop.f32.mrf.mxu3  ;;  %v849_v45 = vmul.f32 %v1809_v23, %v811_v41 }
 0x1ba   :  { %v680_v42 = vadd.f32 %v679_v40, %v631_v38  ;;  %893 = vadd.xlane.f32.xlu2 %v892_v39 }
 0x1bc   :  { %v810_v43 = vmax.f32 %v680_v42, 0.0 }
 0x1bd   :  { %v852_v44 = vpop.xlane.xlu0 %851 }
 0x1be   :  { %v848_v46 = vmul.f32 %v1812_v30, %v810_v43  ;;  %v900_v47 = vadd.f32 %v1876_v14, %v852_v44 }
 0x1c0   :  { %v1467_v48 = vmul.f32 -1.442695, %v900_v47  ;;  %v895_v16 = vadd.f32 %v849_v45, %v848_v46 }
 0x1c2   :  { %1562 = vpow2.f32 %v1467_v48  ;;  %896 = vadd.xlane.f32.xlu0 %v895_v16 }
 0x1c5   :  { %v855_v49 = vpop.xlane.xlu0 %854 }
 0x1c6   :  { %v901_v50 = vadd.f32 %v1876_v14, %v855_v49 }
 0x1c8   :  { %v1563_v51 = vpop.eup %1562  ;;  %v1468_v52 = vmul.f32 -1.442695, %v901_v50 }
 0x1c9   :  { %v964_v53 = vadd.f32 1.0, %v1563_v51 }
 0x1ca   :  { %1564 = vpow2.f32 %v1468_v52 }
 0x1cb   :  { %1566 = vrcp.f32 %v964_v53  ;;  %v991_v60 = vand.u32 2147483648, %v964_v53  ;;  %v989_v63 = vand.u32 2147483647, %v964_v53  ;;  %vm985_vm1 = vweird.f32 %v964_v53 }
 0x1cd   :  { %v858_v54 = vpop.xlane.xlu1 %857  ;;  %v992_v5 = vor.u32 1.1754944e-38, %v991_v60  ;;  %vm990_vm4 = vcmp.eq.f32.partialorder %v989_v63, 8.507059e+37 }
 0x1ce   :  { %v902_v55 = vadd.f32 %v1876_v14, %v858_v54 }
 0x1d0   :  { %v1565_v23 = vpop.eup %1564  ;;  %v1469_v56 = vmul.f32 -1.442695, %v902_v55 }
 0x1d1   :  { %v1567_v30 = vpop.eup %1566  ;;  %v965_v57 = vadd.f32 1.0, %v1565_v23 }
 0x1d2   :  { %v981_v58 = vmul.f32 %v1567_v30, %v964_v53  ;;  %1568 = vpow2.f32 %v1469_v56  ;;  %vm986_vm0 = vweird.f32 %v1567_v30 }
 0x1d3   :  { %1570 = vrcp.f32 %v965_v57  ;;  %vm987_vm3 = vmor %vm985_vm1, %vm986_vm0  ;;  %v1006_v11 = vand.u32 2147483648, %v965_v57  ;;  %v1004_v27 = vand.u32 2147483647, %v965_v57  ;;  %vm1000_vm6 = vweird.f32 %v965_v57 }
 0x1d4   :  { %v982_v59 = vsub.f32 1.0, %v981_v58 }
 0x1d5   :  { %v861_v61 = vpop.xlane.xlu1 %860  ;;  %v1007_v20 = vor.u32 1.1754944e-38, %v1006_v11  ;;  %vm1005_vm8 = vcmp.eq.f32.partialorder %v1004_v27, 8.507059e+37 }
 0x1d6   :  { %v983_v62 = vmul.f32 %v1567_v30, %v982_v59  ;;  %v903_v0 = vadd.f32 %v1876_v14, %v861_v61 }
 0x1d8   :  { %v1569_v1 = vpop.eup %1568  ;;  %v984_v2 = vadd.f32 %v1567_v30, %v983_v62  ;;  %v1470_v3 = vmul.f32 -1.442695, %v903_v0 }
 0x1d9   :  { %v1571_v4 = vpop.eup %1570  ;;  %v966_v6 = vadd.f32 1.0, %v1569_v1 }
 0x1da   :  { %v988_v7 = vsel %vm987_vm3, %v1567_v30, %v984_v2  ;;  %v996_v8 = vmul.f32 %v1571_v4, %v965_v57  ;;  %1572 = vpow2.f32 %v1470_v3  ;;  %vm1001_vm5 = vweird.f32 %v1571_v4 }
 0x1db   :  { %v993_v9 = vsel %vm990_vm4, %v992_v5, %v988_v7  ;;  %1574 = vrcp.f32 %v966_v6  ;;  %vm1002_vm7 = vmor %vm1000_vm6, %vm1001_vm5  ;;  %v1021_v29 = vand.u32 2147483648, %v966_v6  ;;  %v1019_v33 = vand.u32 2147483647, %v966_v6 }
 0x1dc   :  { %1221 = vst.msk [vmem:[%s1967_s7] sm:$0xff] %vm1220_vm2, %v993_v9  ;;  %v997_v10 = vsub.f32 1.0, %v996_v8  ;;  %vm1015_vm10 = vweird.f32 %v966_v6 }
 0x1dd   :  { %v864_v12 = vpop.xlane.xlu2 %863  ;;  %v1022_v39 = vor.u32 1.1754944e-38, %v1021_v29  ;;  %vm1020_vm12 = vcmp.eq.f32.partialorder %v1019_v33, 8.507059e+37 }
 0x1de   :  { %v998_v13 = vmul.f32 %v1571_v4, %v997_v10  ;;  %v904_v15 = vadd.f32 %v1876_v14, %v864_v12 }
 0x1e0   :  { %v1573_v28 = vpop.eup %1572  ;;  %v999_v17 = vadd.f32 %v1571_v4, %v998_v13  ;;  %v1471_v18 = vmul.f32 -1.442695, %v904_v15 }
 0x1e1   :  { %v1575_v19 = vpop.eup %1574  ;;  %v967_v21 = vadd.f32 1.0, %v1573_v28 }
 0x1e2   :  { %v1003_v22 = vsel %vm1002_vm7, %v1571_v4, %v999_v17  ;;  %v1011_v24 = vmul.f32 %v1575_v19, %v966_v6  ;;  %1576 = vpow2.f32 %v1471_v18  ;;  %vm1016_vm9 = vweird.f32 %v1575_v19 }
 0x1e3   :  { %v1008_v25 = vsel %vm1005_vm8, %v1007_v20, %v1003_v22  ;;  %1578 = vrcp.f32 %v967_v21  ;;  %vm1017_vm11 = vmor %vm1015_vm10, %vm1016_vm9  ;;  %v1036_v45 = vand.u32 2147483648, %v967_v21  ;;  %v1034_v48 = vand.u32 2147483647, %v967_v21 }
 0x1e4   :  { %1222 = vst.msk [vmem:[%s1967_s7 + $0x8] sm:$0xff] %vm1220_vm2, %v1008_v25  ;;  %v1012_v26 = vsub.f32 1.0, %v1011_v24  ;;  %vm1030_vm14 = vweird.f32 %v967_v21 }
 0x1e5   :  { %v867_v31 = vpop.xlane.xlu2 %866  ;;  %v1037_v53 = vor.u32 1.1754944e-38, %v1036_v45  ;;  %vm1035_vm0 = vcmp.eq.f32.partialorder %v1034_v48, 8.507059e+37 }
 0x1e6   :  { %v1013_v32 = vmul.f32 %v1575_v19, %v1012_v26  ;;  %v905_v34 = vadd.f32 %v1876_v14, %v867_v31 }
 0x1e8   :  { %v1577_v35 = vpop.eup %1576  ;;  %v1014_v36 = vadd.f32 %v1575_v19, %v1013_v32  ;;  %v1472_v37 = vmul.f32 -1.442695, %v905_v34 }
 0x1e9   :  { %v1579_v38 = vpop.eup %1578  ;;  %v968_v40 = vadd.f32 1.0, %v1577_v35 }
 0x1ea   :  { %v1018_v41 = vsel %vm1017_vm11, %v1575_v19, %v1014_v36  ;;  %v1026_v42 = vmul.f32 %v1579_v38, %v967_v21  ;;  %1580 = vpow2.f32 %v1472_v37  ;;  %vm1031_vm13 = vweird.f32 %v1579_v38 }
 0x1eb   :  { %v1023_v43 = vsel %vm1020_vm12, %v1022_v39, %v1018_v41  ;;  %1582 = vrcp.f32 %v968_v40  ;;  %vm1032_vm15 = vmor %vm1030_vm14, %vm1031_vm13  ;;  %v1051_v57 = vand.u32 2147483648, %v968_v40  ;;  %v1049_v60 = vand.u32 2147483647, %v968_v40 }
 0x1ec   :  { %1223 = vst.msk [vmem:[%s1967_s7 + $0x10] sm:$0xff] %vm1220_vm2, %v1023_v43  ;;  %v1027_v44 = vsub.f32 1.0, %v1026_v42  ;;  %vm1045_vm3 = vweird.f32 %v968_v40 }
 0x1ed   :  { %v870_v46 = vpop.xlane.xlu0 %869  ;;  %v1052_v2 = vor.u32 1.1754944e-38, %v1051_v57  ;;  %vm1050_vm5 = vcmp.eq.f32.partialorder %v1049_v60, 8.507059e+37 }
 0x1ee   :  { %v1028_v47 = vmul.f32 %v1579_v38, %v1027_v44  ;;  %v906_v16 = vadd.f32 %v1876_v14, %v870_v46 }
 0x1f0   :  { %v1581_v49 = vpop.eup %1580  ;;  %v1029_v50 = vadd.f32 %v1579_v38, %v1028_v47  ;;  %v1473_v51 = vmul.f32 -1.442695, %v906_v16 }
 0x1f1   :  { %v1583_v52 = vpop.eup %1582  ;;  %v969_v54 = vadd.f32 1.0, %v1581_v49 }
 0x1f2   :  { %v1033_v55 = vsel %vm1032_vm15, %v1579_v38, %v1029_v50  ;;  %v1041_v23 = vmul.f32 %v1583_v52, %v968_v40  ;;  %1584 = vpow2.f32 %v1473_v51  ;;  %vm1046_vm1 = vweird.f32 %v1583_v52 }
 0x1f3   :  { %v1038_v56 = vsel %vm1035_vm0, %v1037_v53, %v1033_v55  ;;  %1586 = vrcp.f32 %v969_v54  ;;  %vm1047_vm4 = vmor %vm1045_vm3, %vm1046_vm1  ;;  %v1066_v8 = vand.u32 2147483648, %v969_v54  ;;  %v1064_v11 = vand.u32 2147483647, %v969_v54 }
 0x1f4   :  { %1224 = vst.msk [vmem:[%s1967_s7 + $0x18] sm:$0xff] %vm1220_vm2, %v1038_v56  ;;  %v1042_v30 = vsub.f32 1.0, %v1041_v23  ;;  %vm1060_vm7 = vweird.f32 %v969_v54 }
 0x1f5   :  { %v873_v58 = vpop.xlane.xlu1 %872  ;;  %v1067_v17 = vor.u32 1.1754944e-38, %v1066_v8  ;;  %vm1065_vm9 = vcmp.eq.f32.partialorder %v1064_v11, 8.507059e+37 }
 0x1f6   :  { %v1043_v59 = vmul.f32 %v1583_v52, %v1042_v30  ;;  %v907_v61 = vadd.f32 %v1876_v14, %v873_v58 }
 0x1f8   :  { %v1585_v62 = vpop.eup %1584  ;;  %v1044_v63 = vadd.f32 %v1583_v52, %v1043_v59  ;;  %v1474_v0 = vmul.f32 -1.442695, %v907_v61 }
 0x1f9   :  { %v1587_v1 = vpop.eup %1586  ;;  %v970_v3 = vadd.f32 1.0, %v1585_v62 }
 0x1fa   :  { %v1048_v4 = vsel %vm1047_vm4, %v1583_v52, %v1044_v63  ;;  %v1056_v5 = vmul.f32 %v1587_v1, %v969_v54  ;;  %1588 = vpow2.f32 %v1474_v0  ;;  %vm1061_vm6 = vweird.f32 %v1587_v1 }
 0x1fb   :  { %v1053_v6 = vsel %vm1050_vm5, %v1052_v2, %v1048_v4  ;;  %1590 = vrcp.f32 %v970_v3  ;;  %vm1062_vm8 = vmor %vm1060_vm7, %vm1061_vm6  ;;  %v1081_v24 = vand.u32 2147483648, %v970_v3  ;;  %v1079_v29 = vand.u32 2147483647, %v970_v3 }
 0x1fc   :  { %1225 = vst.msk [vmem:[%s1967_s7 + $0x20] sm:$0xff] %vm1220_vm2, %v1053_v6  ;;  %v1057_v7 = vsub.f32 1.0, %v1056_v5  ;;  %vm1075_vm11 = vweird.f32 %v970_v3 }
 0x1fd   :  { %v876_v9 = vpop.xlane.xlu2 %875  ;;  %v1082_v36 = vor.u32 1.1754944e-38, %v1081_v24  ;;  %vm1080_vm13 = vcmp.eq.f32.partialorder %v1079_v29, 8.507059e+37 }
 0x1fe   :  { %v1058_v10 = vmul.f32 %v1587_v1, %v1057_v7  ;;  %v908_v12 = vadd.f32 %v1876_v14, %v876_v9 }
 0x200   :  { %v1589_v13 = vpop.eup %1588  ;;  %v1059_v27 = vadd.f32 %v1587_v1, %v1058_v10  ;;  %v1475_v15 = vmul.f32 -1.442695, %v908_v12 }
 0x201   :  { %v1591_v28 = vpop.eup %1590  ;;  %v971_v18 = vadd.f32 1.0, %v1589_v13 }
 0x202   :  { %v1063_v19 = vsel %vm1062_vm8, %v1587_v1, %v1059_v27  ;;  %v1071_v20 = vmul.f32 %v1591_v28, %v970_v3  ;;  %1592 = vpow2.f32 %v1475_v15  ;;  %vm1076_vm10 = vweird.f32 %v1591_v28 }
 0x203   :  { %v1068_v21 = vsel %vm1065_vm9, %v1067_v17, %v1063_v19  ;;  %1594 = vrcp.f32 %v971_v18  ;;  %vm1077_vm12 = vmor %vm1075_vm11, %vm1076_vm10  ;;  %v1096_v42 = vand.u32 2147483648, %v971_v18  ;;  %v1094_v45 = vand.u32 2147483647, %v971_v18 }
 0x204   :  { %1226 = vst.msk [vmem:[%s1967_s7 + $0x28] sm:$0xff] %vm1220_vm2, %v1068_v21  ;;  %v1072_v22 = vsub.f32 1.0, %v1071_v20  ;;  %vm1090_vm15 = vweird.f32 %v971_v18 }
 0x205   :  { %v879_v25 = vpop.xlane.xlu0 %878  ;;  %v1097_v50 = vor.u32 1.1754944e-38, %v1096_v42  ;;  %vm1095_vm1 = vcmp.eq.f32.partialorder %v1094_v45, 8.507059e+37 }
 0x206   :  { %v1073_v26 = vmul.f32 %v1591_v28, %v1072_v22  ;;  %v909_v31 = vadd.f32 %v1876_v14, %v879_v25 }
 0x208   :  { %v1593_v32 = vpop.eup %1592  ;;  %v1074_v33 = vadd.f32 %v1591_v28, %v1073_v26  ;;  %v1476_v34 = vmul.f32 -1.442695, %v909_v31 }
 0x209   :  { %v1595_v35 = vpop.eup %1594  ;;  %v972_v37 = vadd.f32 1.0, %v1593_v32 }
 0x20a   :  { %v1078_v38 = vsel %vm1077_vm12, %v1591_v28, %v1074_v33  ;;  %v1086_v39 = vmul.f32 %v1595_v35, %v971_v18  ;;  %1596 = vpow2.f32 %v1476_v34  ;;  %vm1091_vm14 = vweird.f32 %v1595_v35 }
 0x20b   :  { %v1083_v40 = vsel %vm1080_vm13, %v1082_v36, %v1078_v38  ;;  %1598 = vrcp.f32 %v972_v37  ;;  %vm1092_vm0 = vmor %vm1090_vm15, %vm1091_vm14  ;;  %v1111_v23 = vand.u32 2147483648, %v972_v37  ;;  %v1109_v57 = vand.u32 2147483647, %v972_v37 }
 0x20c   :  { %1227 = vst.msk [vmem:[%s1967_s7 + $0x30] sm:$0xff] %vm1220_vm2, %v1083_v40  ;;  %v1087_v41 = vsub.f32 1.0, %v1086_v39  ;;  %vm1105_vm4 = vweird.f32 %v972_v37 }
 0x20d   :  { %v882_v43 = vpop.xlane.xlu1 %881  ;;  %v1112_v63 = vor.u32 1.1754944e-38, %v1111_v23  ;;  %vm1110_vm6 = vcmp.eq.f32.partialorder %v1109_v57, 8.507059e+37 }
 0x20e   :  { %v1088_v44 = vmul.f32 %v1595_v35, %v1087_v41  ;;  %v910_v46 = vadd.f32 %v1876_v14, %v882_v43 }
 0x210   :  { %v1597_v47 = vpop.eup %1596  ;;  %v1089_v48 = vadd.f32 %v1595_v35, %v1088_v44  ;;  %v1477_v16 = vmul.f32 -1.442695, %v910_v46 }
 0x211   :  { %v1599_v49 = vpop.eup %1598  ;;  %v973_v51 = vadd.f32 1.0, %v1597_v47 }
 0x212   :  { %v1093_v52 = vsel %vm1092_vm0, %v1595_v35, %v1089_v48  ;;  %v1101_v53 = vmul.f32 %v1599_v49, %v972_v37  ;;  %1600 = vpow2.f32 %v1477_v16  ;;  %vm1106_vm3 = vweird.f32 %v1599_v49 }
 0x213   :  { %v1098_v54 = vsel %vm1095_vm1, %v1097_v50, %v1093_v52  ;;  %1602 = vrcp.f32 %v973_v51  ;;  %vm1107_vm5 = vmor %vm1105_vm4, %vm1106_vm3  ;;  %v1126_v5 = vand.u32 2147483648, %v973_v51  ;;  %v1124_v8 = vand.u32 2147483647, %v973_v51 }
 0x214   :  { %1228 = vst.msk [vmem:[%s1967_s7 + $0x38] sm:$0xff] %vm1220_vm2, %v1098_v54  ;;  %v1102_v55 = vsub.f32 1.0, %v1101_v53  ;;  %vm1120_vm8 = vweird.f32 %v973_v51 }
 0x215   :  { %v885_v56 = vpop.xlane.xlu2 %884  ;;  %v1127_v27 = vor.u32 1.1754944e-38, %v1126_v5  ;;  %vm1125_vm10 = vcmp.eq.f32.partialorder %v1124_v8, 8.507059e+37 }
 0x216   :  { %v1103_v30 = vmul.f32 %v1599_v49, %v1102_v55  ;;  %v911_v58 = vadd.f32 %v1876_v14, %v885_v56 }
 0x218   :  { %v1601_v59 = vpop.eup %1600  ;;  %v1104_v60 = vadd.f32 %v1599_v49, %v1103_v30  ;;  %v1478_v61 = vmul.f32 -1.442695, %v911_v58 }
 0x219   :  { %v1603_v62 = vpop.eup %1602  ;;  %v974_v0 = vadd.f32 1.0, %v1601_v59 }
 0x21a   :  { %v1108_v1 = vsel %vm1107_vm5, %v1599_v49, %v1104_v60  ;;  %v1116_v2 = vmul.f32 %v1603_v62, %v973_v51  ;;  %1604 = vpow2.f32 %v1478_v61  ;;  %vm1121_vm7 = vweird.f32 %v1603_v62 }
 0x21b   :  { %v1113_v3 = vsel %vm1110_vm6, %v1112_v63, %v1108_v1  ;;  %1606 = vrcp.f32 %v974_v0  ;;  %vm1122_vm9 = vmor %vm1120_vm8, %vm1121_vm7  ;;  %v1141_v20 = vand.u32 2147483648, %v974_v0  ;;  %v1139_v24 = vand.u32 2147483647, %v974_v0 }
 0x21c   :  { %1229 = vst.msk [vmem:[%s1967_s7 + $0x40] sm:$0xff] %vm1220_vm2, %v1113_v3  ;;  %v1117_v4 = vsub.f32 1.0, %v1116_v2  ;;  %vm1135_vm12 = vweird.f32 %v974_v0 }
 0x21d   :  { %v888_v6 = vpop.xlane.xlu0 %887  ;;  %v1142_v33 = vor.u32 1.1754944e-38, %v1141_v20  ;;  %vm1140_vm14 = vcmp.eq.f32.partialorder %v1139_v24, 8.507059e+37 }
 0x21e   :  { %v1118_v7 = vmul.f32 %v1603_v62, %v1117_v4  ;;  %v912_v9 = vadd.f32 %v1876_v14, %v888_v6 }
 0x220   :  { %v1605_v10 = vpop.eup %1604  ;;  %v1119_v11 = vadd.f32 %v1603_v62, %v1118_v7  ;;  %v1479_v12 = vmul.f32 -1.442695, %v912_v9 }
 0x221   :  { %v1607_v13 = vpop.eup %1606  ;;  %v975_v15 = vadd.f32 1.0, %v1605_v10 }
 0x222   :  { %v1123_v28 = vsel %vm1122_vm9, %v1603_v62, %v1119_v11  ;;  %v1131_v17 = vmul.f32 %v1607_v13, %v974_v0  ;;  %1608 = vpow2.f32 %v1479_v12  ;;  %vm1136_vm11 = vweird.f32 %v1607_v13 }
 0x223   :  { %v1128_v18 = vsel %vm1125_vm10, %v1127_v27, %v1123_v28  ;;  %1610 = vrcp.f32 %v975_v15  ;;  %vm1137_vm13 = vmor %vm1135_vm12, %vm1136_vm11  ;;  %v1156_v39 = vand.u32 2147483648, %v975_v15  ;;  %v1154_v42 = vand.u32 2147483647, %v975_v15 }
 0x224   :  { %1230 = vst.msk [vmem:[%s1967_s7 + $0x48] sm:$0xff] %vm1220_vm2, %v1128_v18  ;;  %v1132_v19 = vsub.f32 1.0, %v1131_v17  ;;  %vm1150_vm0 = vweird.f32 %v975_v15 }
 0x225   :  { %v891_v21 = vpop.xlane.xlu1 %890  ;;  %v1157_v48 = vor.u32 1.1754944e-38, %v1156_v39  ;;  %vm1155_vm3 = vcmp.eq.f32.partialorder %v1154_v42, 8.507059e+37 }
 0x226   :  { %v1133_v22 = vmul.f32 %v1607_v13, %v1132_v19  ;;  %v913_v25 = vadd.f32 %v1876_v14, %v891_v21 }
 0x228   :  { %v1609_v26 = vpop.eup %1608  ;;  %v1134_v29 = vadd.f32 %v1607_v13, %v1133_v22  ;;  %v1480_v31 = vmul.f32 -1.442695, %v913_v25 }
 0x229   :  { %v1611_v32 = vpop.eup %1610  ;;  %v976_v34 = vadd.f32 1.0, %v1609_v26 }
 0x22a   :  { %v1138_v35 = vsel %vm1137_vm13, %v1607_v13, %v1134_v29  ;;  %v1146_v36 = vmul.f32 %v1611_v32, %v975_v15  ;;  %1612 = vpow2.f32 %v1480_v31  ;;  %vm1151_vm15 = vweird.f32 %v1611_v32 }
 0x22b   :  { %v1143_v37 = vsel %vm1140_vm14, %v1142_v33, %v1138_v35  ;;  %1614 = vrcp.f32 %v976_v34  ;;  %vm1152_vm1 = vmor %vm1150_vm0, %vm1151_vm15  ;;  %v1171_v53 = vand.u32 2147483648, %v976_v34  ;;  %v1169_v23 = vand.u32 2147483647, %v976_v34 }
 0x22c   :  { %1231 = vst.msk [vmem:[%s1967_s7 + $0x50] sm:$0xff] %vm1220_vm2, %v1143_v37  ;;  %v1147_v38 = vsub.f32 1.0, %v1146_v36  ;;  %vm1165_vm5 = vweird.f32 %v976_v34 }
 0x22d   :  { %v894_v40 = vpop.xlane.xlu2 %893  ;;  %v1172_v60 = vor.u32 1.1754944e-38, %v1171_v53  ;;  %vm1170_vm7 = vcmp.eq.f32.partialorder %v1169_v23, 8.507059e+37 }
 0x22e   :  { %v1148_v41 = vmul.f32 %v1611_v32, %v1147_v38  ;;  %v914_v43 = vadd.f32 %v1876_v14, %v894_v40 }
 0x230   :  { %v1613_v44 = vpop.eup %1612  ;;  %v1149_v45 = vadd.f32 %v1611_v32, %v1148_v41  ;;  %v1481_v46 = vmul.f32 -1.442695, %v914_v43 }
 0x231   :  { %v1615_v47 = vpop.eup %1614  ;;  %v977_v16 = vadd.f32 1.0, %v1613_v44 }
 0x232   :  { %v1153_v49 = vsel %vm1152_vm1, %v1611_v32, %v1149_v45  ;;  %v1161_v50 = vmul.f32 %v1615_v47, %v976_v34  ;;  %1616 = vpow2.f32 %v1481_v46  ;;  %vm1166_vm4 = vweird.f32 %v1615_v47 }
 0x233   :  { %v1158_v51 = vsel %vm1155_vm3, %v1157_v48, %v1153_v49  ;;  %1618 = vrcp.f32 %v977_v16  ;;  %vm1167_vm6 = vmor %vm1165_vm5, %vm1166_vm4  ;;  %v1186_v1 = vand.u32 2147483648, %v977_v16  ;;  %v1184_v3 = vand.u32 2147483647, %v977_v16 }
 0x234   :  { %1232 = vst.msk [vmem:[%s1967_s7 + $0x58] sm:$0xff] %vm1220_vm2, %v1158_v51  ;;  %v1162_v52 = vsub.f32 1.0, %v1161_v50  ;;  %vm1180_vm9 = vweird.f32 %v977_v16 }
 0x235   :  { %v897_v54 = vpop.xlane.xlu0 %896  ;;  %v1187_v7 = vor.u32 1.1754944e-38, %v1186_v1  ;;  %vm1185_vm11 = vcmp.eq.f32.partialorder %v1184_v3, 8.507059e+37 }
 0x236   :  { %v1163_v55 = vmul.f32 %v1615_v47, %v1162_v52  ;;  %v915_v56 = vadd.f32 %v1876_v14, %v897_v54 }
 0x238   :  { %v1617_v30 = vpop.eup %1616  ;;  %v1164_v57 = vadd.f32 %v1615_v47, %v1163_v55  ;;  %v1482_v58 = vmul.f32 -1.442695, %v915_v56 }
 0x239   :  { %v1619_v59 = vpop.eup %1618  ;;  %v978_v61 = vadd.f32 1.0, %v1617_v30 }
 0x23a   :  { %v1168_v62 = vsel %vm1167_vm6, %v1615_v47, %v1164_v57  ;;  %v1176_v63 = vmul.f32 %v1619_v59, %v977_v16  ;;  %1620 = vpow2.f32 %v1482_v58  ;;  %vm1181_vm8 = vweird.f32 %v1619_v59 }
 0x23b   :  { %v1173_v0 = vsel %vm1170_vm7, %v1172_v60, %v1168_v62  ;;  %1622 = vrcp.f32 %v978_v61  ;;  %vm1182_vm10 = vmor %vm1180_vm9, %vm1181_vm8  ;;  %v1201_v13 = vand.u32 2147483648, %v978_v61  ;;  %v1199_v15 = vand.u32 2147483647, %v978_v61 }
 0x23c   :  { %1233 = vst.msk [vmem:[%s1967_s7 + $0x60] sm:$0xff] %vm1220_vm2, %v1173_v0  ;;  %v1177_v14 = vsub.f32 1.0, %v1176_v63  ;;  %vm1195_vm13 = vweird.f32 %v978_v61 }
 0x23d   :  { %v1202_v18 = vor.u32 1.1754944e-38, %v1201_v13  ;;  %vm1200_vm15 = vcmp.eq.f32.partialorder %v1199_v15, 8.507059e+37 }
 0x23e   :  { %v1178_v2 = vmul.f32 %v1619_v59, %v1177_v14 }
 0x240   :  { %v1621_v4 = vpop.eup %1620  ;;  %v1179_v5 = vadd.f32 %v1619_v59, %v1178_v2 }
 0x241   :  { %v1623_v6 = vpop.eup %1622  ;;  %v979_v8 = vadd.f32 1.0, %v1621_v4 }
 0x242   :  { %v1183_v9 = vsel %vm1182_vm10, %v1619_v59, %v1179_v5  ;;  %v1191_v10 = vmul.f32 %v1623_v6, %v978_v61  ;;  %vm1196_vm12 = vweird.f32 %v1623_v6 }
 0x243   :  { %v1188_v11 = vsel %vm1185_vm11, %v1187_v7, %v1183_v9  ;;  %1624 = vrcp.f32 %v979_v8  ;;  %vm1197_vm14 = vmor %vm1195_vm13, %vm1196_vm12  ;;  %v1216_v24 = vand.u32 2147483648, %v979_v8  ;;  %v1214_v26 = vand.u32 2147483647, %v979_v8 }
 0x244   :  { %1234 = vst.msk [vmem:[%s1967_s7 + $0x68] sm:$0xff] %vm1220_vm2, %v1188_v11  ;;  %v1192_v12 = vsub.f32 1.0, %v1191_v10  ;;  %vm1210_vm1 = vweird.f32 %v979_v8 }
 0x245   :  { %v1217_v31 = vor.u32 1.1754944e-38, %v1216_v24  ;;  %vm1215_vm4 = vcmp.eq.f32.partialorder %v1214_v26, 8.507059e+37 }
 0x246   :  { %v1193_v27 = vmul.f32 %v1623_v6, %v1192_v12 }
 0x248   :  { %v1194_v28 = vadd.f32 %v1623_v6, %v1193_v27 }
 0x249   :  { %v1625_v17 = vpop.eup %1624 }
 0x24a   :  { %v1198_v19 = vsel %vm1197_vm14, %v1623_v6, %v1194_v28  ;;  %v1206_v20 = vmul.f32 %v1625_v17, %v979_v8  ;;  %vm1211_vm0 = vweird.f32 %v1625_v17 }
 0x24b   :  { %v1203_v21 = vsel %vm1200_vm15, %v1202_v18, %v1198_v19  ;;  %vm1212_vm3 = vmor %vm1210_vm1, %vm1211_vm0 }
 0x24c   :  { %1235 = vst.msk [vmem:[%s1967_s7 + $0x70] sm:$0xff] %vm1220_vm2, %v1203_v21  ;;  %v1207_v22 = vsub.f32 1.0, %v1206_v20 }
 0x24e   :  { %v1208_v25 = vmul.f32 %v1625_v17, %v1207_v22 }
 0x250   :  { %v1209_v29 = vadd.f32 %v1625_v17, %v1208_v25 }
 0x252   :  { %v1213_v32 = vsel %vm1212_vm3, %v1625_v17, %v1209_v29 }
 0x253   :  { %v1218_v33 = vsel %vm1215_vm4, %v1217_v31, %v1213_v32 }
 0x254   :  { %1236 = vst.msk [vmem:[%s1967_s7 + $0x78] sm:$0xff] %vm1220_vm2, %v1218_v33 }
 0x255   :  { %1241 = vsyncpa [#allocation4], 1 }
 0x256   :  { %1242 = vsyncpa [#allocation6], 1 }

</bundles_post_ra>
